<compile_context>
chip_gen: v5e
topology: v5e:2x2
jax: 0.10.0
libtpu: 0.0.40
codegen_flags: <defaults>
</compile_context>

<pallas_src>
import jax
import jax.numpy as jnp
from jax import lax
from jax.experimental import pallas as pl
from jax.experimental.pallas import tpu as pltpu


def lstm_kernel(x_ref, wih0_ref, b0_ref, wf_ref, b1_ref, wfc_ref, bfc_ref,
                out_ref, pre_scr):
    """x_ref: (T*Bp, D) time-major; out_ref: (Bp, 128), column 0 = fc output.

    All weights arrive pre-scaled: i/f/o gate columns x0.5 (single-tanh trick),
    g columns x1.  wf_ref is the fused (2G, 2G) recurrent weight.
    """
    Bp = out_ref.shape[0]
    G = wf_ref.shape[1] // 2        # 4H
    H = G // 4
    T = x_ref.shape[0] // Bp

    # One batched MXU pass: input->gate contribution (+ folded, pre-scaled
    # bias) for every timestep of layer 0.
    pre_scr[...] = (
        jnp.dot(x_ref[...], wih0_ref[...], preferred_element_type=jnp.float32)
        + b0_ref[...])

    # Hoisted per-lane affine constants: sigmoid(x) = 0.5*tanh(x/2) + 0.5 on
    # the i/f/o quarters, identity (tanh) on the g quarter.  Built full-shape
    # so no broadcast is re-materialized inside the unrolled loop.
    lane = lax.broadcasted_iota(jnp.int32, (Bp, G), 1)
    is_g = (lane >= 2 * H) & (lane < 3 * H)
    a_vec = jnp.where(is_g, 1.0, 0.5).astype(jnp.float32)
    b_vec = jnp.where(is_g, 0.0, 0.5).astype(jnp.float32)
    b1_full = b1_ref[...]                                   # hoisted load

    def cell(gates, c):
        # Single full-vreg transcendental (EUP); sigmoid recovered by affine.
        t = jnp.tanh(gates)
        act = a_vec * t + b_vec                 # i/f/o: sigmoid, g: tanh
        i_g = act                               # lanes [0,H) = input gate
        f_g = pltpu.roll(act, 3 * H, 1)         # lanes [0,H) = forget gate
        g_g = pltpu.roll(act, 2 * H, 1)         # lanes [0,H) = cell gate
        o_g = pltpu.roll(act, 1 * H, 1)         # lanes [0,H) = output gate
        c_new = f_g * c + i_g * g_g             # valid in lanes [0,H)
        h_new = o_g * jnp.tanh(c_new)           # valid in lanes [0,H)
        return h_new, c_new

    def step(t, carry):
        # carry: h1 = h1(t-1), c0/c1 cell states, rec0 = h0(t-1) @ Whh0
        h1, c0, c1, rec0 = carry
        row = pl.multiple_of(t * Bp, Bp)
        pre_t = pre_scr[pl.ds(row, Bp), :]                  # (Bp, G)
        # layer 0: no matmul on this part of the chain (rec0 precomputed)
        gates0 = pre_t + rec0
        h0, c0 = cell(gates0, c0)
        # single fused recurrent matmul: LHS = [h0(t) | h1(t-1)]  (vreg-aligned
        # assembly; operand is consumed directly by the MXU)
        lhs = jnp.concatenate([h0, h1], axis=1)             # (Bp, 2G)
        fused = jnp.dot(lhs, wf_ref[...],
                        preferred_element_type=jnp.float32)  # (Bp, 2G)
        rec0_next = fused[:, :G]                            # -> gates0(t+1)
        gates1 = fused[:, G:] + b1_full                     # gates1(t)
        h1, c1 = cell(gates1, c1)
        return h1, c0, c1, rec0_next

    z = jnp.zeros((Bp, G), jnp.float32)
    h1, _, _, _ = lax.fori_loop(0, T, step, (z, z, z, z), unroll=True)

    # final fc on the last top-layer hidden state (lane-dense output block)
    out_ref[...] = (
        jnp.dot(h1, wfc_ref[...], preferred_element_type=jnp.float32)
        + bfc_ref[...])


def lstm_forward(x, params):
    """x: (B, T, D) float32 -> (B, 1) float32 (matches the torch module)."""
    B, T, D = x.shape
    wih0, whh0, b0, wih1, whh1, b1, wfc, bfc = params
    H = whh0.shape[0]
    G = 4 * H
    Bp = ((B + 7) // 8) * 8                    # pad batch to a sublane multiple

    # Gate-column pre-scale: 0.5 on i/f/o columns, 1.0 on g columns, so the
    # kernel only needs one tanh per gate vector (sigmoid via affine).
    col_scale = jnp.concatenate([
        jnp.full((H,), 0.5, jnp.float32), jnp.full((H,), 0.5, jnp.float32),
        jnp.full((H,), 1.0, jnp.float32), jnp.full((H,), 0.5, jnp.float32)])

    wih0_s = (wih0 * col_scale).astype(jnp.float32)          # (D, G)
    b0_s = (b0 * col_scale).astype(jnp.float32)              # (1, G)
    whh0_s = (whh0 * col_scale).astype(jnp.float32)          # (H, G)
    wih1_s = (wih1 * col_scale).astype(jnp.float32)          # (H, G)
    whh1_s = (whh1 * col_scale).astype(jnp.float32)          # (H, G)
    b1_s = (b1 * col_scale).astype(jnp.float32)              # (1, G)

    # time-major, batch-padded input, flattened to (T*Bp, D)
    xt = jnp.transpose(x, (1, 0, 2))
    xt = jnp.pad(xt, ((0, 0), (0, Bp - B), (0, 0)))
    x2d = xt.reshape(T * Bp, D)

    # Fused recurrent weight (2G, 2G): rows [0,G) belong to the h0 lanes
    # (only rows [0,H) real), rows [G,2G) to the h1 lanes (rows [G,G+H) real).
    #   cols [0,G)  = Whh0   -> h0@Whh0            (gates0 of the next step)
    #   cols [G,2G) = [Wih1; Whh1] -> gates1 of this step
    # Zero padding guarantees the garbage lanes [H,4H) of h0/h1 never leak.
    wf = (jnp.zeros((2 * G, 2 * G), jnp.float32)
          .at[:H, :G].set(whh0_s)
          .at[:H, G:].set(wih1_s)
          .at[G:G + H, G:].set(whh1_s))
    b1_full = jnp.broadcast_to(b1_s, (Bp, G))               # hoisted broadcast
    wfc_pad = jnp.zeros((G, 128), jnp.float32).at[:H, :1].set(wfc)

    const2 = lambda i: (0, 0)
    out = pl.pallas_call(
        lstm_kernel,
        out_shape=jax.ShapeDtypeStruct((Bp, 128), jnp.float32),
        grid=(1,),
        in_specs=[
            pl.BlockSpec((T * Bp, D), const2),     # x (time-major, padded)
            pl.BlockSpec((D, G), const2),          # W_ih layer 0 (scaled)
            pl.BlockSpec((1, G), const2),          # bias layer 0 (folded, scaled)
            pl.BlockSpec((2 * G, 2 * G), const2),  # fused recurrent weight
            pl.BlockSpec((Bp, G), const2),         # bias layer 1 (pre-broadcast)
            pl.BlockSpec((G, 128), const2),        # fc weight (lane-padded)
            pl.BlockSpec((1, 1), const2),          # fc bias
        ],
        out_specs=pl.BlockSpec((Bp, 128), const2),
        scratch_shapes=[pltpu.VMEM((T * Bp, G), jnp.float32)],
        compiler_params=pltpu.CompilerParams(
            dimension_semantics=("arbitrary",)),
    )(x2d, wih0_s, b0_s, wf, b1_full, wfc_pad, bfc)
    return out[:B, :1]


def lstm_reference(x, params):
    """Pure-JAX reference mirroring torch.nn.LSTM(num_layers=2) + Linear."""
    wih0, whh0, b0, wih1, whh1, b1, wfc, bfc = params
    B, T, _ = x.shape
    H = whh0.shape[0]

    def cell(inp, h, c, wih, whh, b):
        gates = inp @ wih + h @ whh + b
        i = jax.nn.sigmoid(gates[:, 0 * H:1 * H])
        f = jax.nn.sigmoid(gates[:, 1 * H:2 * H])
        g = jnp.tanh(gates[:, 2 * H:3 * H])
        o = jax.nn.sigmoid(gates[:, 3 * H:4 * H])
        c = f * c + i * g
        h = o * jnp.tanh(c)
        return h, c

    h0 = c0 = h1 = c1 = jnp.zeros((B, H), jnp.float32)
    for t in range(T):
        h0, c0 = cell(x[:, t, :], h0, c0, wih0, whh0, b0)
        h1, c1 = cell(h0, h1, c1, wih1, whh1, b1)
    return h1 @ wfc + bfc


def make_params(key, input_size, hidden_size):
    """Deterministic synthetic parameters (torch gate order i,f,g,o)."""
    H = hidden_size
    ks = jax.random.split(key, 8)
    scale = 1.0 / jnp.sqrt(H)
    wih0 = jax.random.uniform(ks[0], (input_size, 4 * H), jnp.float32, -scale, scale)
    whh0 = jax.random.uniform(ks[1], (H, 4 * H), jnp.float32, -scale, scale)
    b0 = jax.random.uniform(ks[2], (1, 4 * H), jnp.float32, -scale, scale)  # b_ih+b_hh folded
    wih1 = jax.random.uniform(ks[3], (H, 4 * H), jnp.float32, -scale, scale)
    whh1 = jax.random.uniform(ks[4], (H, 4 * H), jnp.float32, -scale, scale)
    b1 = jax.random.uniform(ks[5], (1, 4 * H), jnp.float32, -scale, scale)
    wfc = jax.random.uniform(ks[6], (H, 1), jnp.float32, -scale, scale)
    bfc = jax.random.uniform(ks[7], (1, 1), jnp.float32, -scale, scale)
    return (wih0, whh0, b0, wih1, whh1, b1, wfc, bfc)


if __name__ == "__main__":
    # Shapes consistent with the module: batch=2, seq=8, input=4, hidden=32,
    # num_stacked_layers=2.
    B, T, D, H = 2, 8, 4, 32
    key = jax.random.PRNGKey(0)
    kx, kp = jax.random.split(key)
    x = jax.random.normal(kx, (B, T, D), jnp.float32)
    params = make_params(kp, D, H)

    out = lstm_forward(x, params)
    out = jax.block_until_ready(out)

    ref = lstm_reference(x, params)
    assert out.shape == (B, 1)
    assert jnp.allclose(out, ref, atol=1e-4, rtol=1e-4), (out, ref)
    print("KERNEL_OK")
</pallas_src>

<mosaic_0001>
module attributes {stable_mosaic.version = 11 : i64} {
  func.func @lstm_kernel(%arg0: i32, %arg1: memref<64x4xf32, #tpu.memory_space<vmem>>, %arg2: memref<4x128xf32, #tpu.memory_space<vmem>>, %arg3: memref<1x128xf32, #tpu.memory_space<vmem>>, %arg4: memref<256x256xf32, #tpu.memory_space<vmem>>, %arg5: memref<8x128xf32, #tpu.memory_space<vmem>>, %arg6: memref<128x128xf32, #tpu.memory_space<vmem>>, %arg7: memref<1x1xf32, #tpu.memory_space<vmem>>, %arg8: memref<8x128xf32, #tpu.memory_space<vmem>>, %arg9: memref<64x128xf32, #tpu.memory_space<vmem>>) attributes {dimension_semantics = [#tpu.dimension_semantics<arbitrary>], iteration_bounds = array<i64: 1>, scalar_prefetch = 0 : i64, scratch_operands = 1 : i64, tpu.core_type = #tpu.core_type<tc>, window_params = [{pipeline_mode = #tpu.pipeline_mode<synchronous>, transform_indices = @transform_0, window_bounds = array<i64: 64, 4>}, {pipeline_mode = #tpu.pipeline_mode<synchronous>, transform_indices = @transform_1, window_bounds = array<i64: 4, 128>}, {pipeline_mode = #tpu.pipeline_mode<synchronous>, transform_indices = @transform_2, window_bounds = array<i64: 1, 128>}, {pipeline_mode = #tpu.pipeline_mode<synchronous>, transform_indices = @transform_3, window_bounds = array<i64: 256, 256>}, {pipeline_mode = #tpu.pipeline_mode<synchronous>, transform_indices = @transform_4, window_bounds = array<i64: 8, 128>}, {pipeline_mode = #tpu.pipeline_mode<synchronous>, transform_indices = @transform_5, window_bounds = array<i64: 128, 128>}, {pipeline_mode = #tpu.pipeline_mode<synchronous>, transform_indices = @transform_6, window_bounds = array<i64: 1, 1>}, {pipeline_mode = #tpu.pipeline_mode<synchronous>, transform_indices = @transform_7, window_bounds = array<i64: 8, 128>}]} {
    %c0 = arith.constant 0 : index
    %c0_0 = arith.constant 0 : index
    %0 = vector.load %arg1[%c0, %c0_0] : memref<64x4xf32, #tpu.memory_space<vmem>>, vector<64x4xf32>
    %c0_1 = arith.constant 0 : index
    %c0_2 = arith.constant 0 : index
    %1 = vector.load %arg2[%c0_1, %c0_2] : memref<4x128xf32, #tpu.memory_space<vmem>>, vector<4x128xf32>
    %cst = arith.constant dense<0.000000e+00> : vector<64x128xf32>
    %2 = tpu.matmul %0, %1, %cst {dimension_numbers = #tpu.dot_dimension_numbers<[1], [0], [0], [1], [0, 0, 1, 1], [], []>} : vector<64x4xf32>, vector<4x128xf32>, vector<64x128xf32> -> vector<64x128xf32>
    %c0_3 = arith.constant 0 : index
    %c0_4 = arith.constant 0 : index
    %3 = vector.load %arg3[%c0_3, %c0_4] : memref<1x128xf32, #tpu.memory_space<vmem>>, vector<1x128xf32>
    %4 = vector.broadcast %3 : vector<1x128xf32> to vector<64x128xf32>
    %5 = arith.addf %2, %4 : vector<64x128xf32>
    %c0_5 = arith.constant 0 : index
    %c0_6 = arith.constant 0 : index
    %6 = vector.load %arg9[%c0_5, %c0_6] : memref<64x128xf32, #tpu.memory_space<vmem>>, vector<64x128xf32>
    tpu.vector_store %arg9[%c0_5, %c0_6], %5 {strides = array<i32>} : memref<64x128xf32, #tpu.memory_space<vmem>>, vector<64x128xf32>,
    %7 = tpu.iota {dimensions = array<i32: 1>} : vector<8x128xi32>
    %c64_i32 = arith.constant 64 : i32
    %8 = vector.broadcast %c64_i32 : i32 to vector<8x128xi32>
    %9 = arith.cmpi sge, %7, %8 : vector<8x128xi32>
    %c96_i32 = arith.constant 96 : i32
    %10 = vector.broadcast %c96_i32 : i32 to vector<8x128xi32>
    %11 = arith.cmpi slt, %7, %10 : vector<8x128xi32>
    %12 = arith.andi %9, %11 : vector<8x128xi1>
    %cst_7 = arith.constant 1.000000e+00 : f32
    %cst_8 = arith.constant 5.000000e-01 : f32
    %13 = vector.broadcast %cst_7 : f32 to vector<8x128xf32>
    %14 = vector.broadcast %cst_8 : f32 to vector<8x128xf32>
    %15 = arith.select %12, %13, %14 : vector<8x128xi1>, vector<8x128xf32>
    %cst_9 = arith.constant 0.000000e+00 : f32
    %cst_10 = arith.constant 5.000000e-01 : f32
    %16 = vector.broadcast %cst_9 : f32 to vector<8x128xf32>
    %17 = vector.broadcast %cst_10 : f32 to vector<8x128xf32>
    %18 = arith.select %12, %16, %17 : vector<8x128xi1>, vector<8x128xf32>
    %c0_11 = arith.constant 0 : index
    %c0_12 = arith.constant 0 : index
    %19 = vector.load %arg5[%c0_11, %c0_12] : memref<8x128xf32, #tpu.memory_space<vmem>>, vector<8x128xf32>
    %cst_13 = arith.constant 0.000000e+00 : f32
    %20 = vector.broadcast %cst_13 : f32 to vector<8x128xf32>
    %c0_i32 = arith.constant 0 : i32
    %c8_i32 = arith.constant 8 : i32
    %21 = arith.muli %c0_i32, %c8_i32 : i32
    %22 = tpu.assume_multiple %21, 8 : i32
    %23 = arith.index_cast %22 : i32 to index
    %c0_14 = arith.constant 0 : index
    %24 = vector.load %arg9[%23, %c0_14] : memref<64x128xf32, #tpu.memory_space<vmem>>, vector<8x128xf32>
    %25 = arith.addf %24, %20 : vector<8x128xf32>
    %26 = math.tanh %25 : vector<8x128xf32>
    %27 = arith.mulf %15, %26 : vector<8x128xf32>
    %28 = arith.addf %27, %18 : vector<8x128xf32>
    %c96_i32_15 = arith.constant 96 : i32
    %29 = tpu.dynamic_rotate %28 by %c96_i32_15 dim 1 : vector<8x128xf32>, i32 -> vector<8x128xf32>
    %c64_i32_16 = arith.constant 64 : i32
    %30 = tpu.dynamic_rotate %28 by %c64_i32_16 dim 1 : vector<8x128xf32>, i32 -> vector<8x128xf32>
    %c32_i32 = arith.constant 32 : i32
    %31 = tpu.dynamic_rotate %28 by %c32_i32 dim 1 : vector<8x128xf32>, i32 -> vector<8x128xf32>
    %32 = arith.mulf %29, %20 : vector<8x128xf32>
    %33 = arith.mulf %28, %30 : vector<8x128xf32>
    %34 = arith.addf %32, %33 : vector<8x128xf32>
    %35 = math.tanh %34 : vector<8x128xf32>
    %36 = arith.mulf %31, %35 : vector<8x128xf32>
    %37 = tpu.concatenate %36, %20 in 1 : vector<8x128xf32>, vector<8x128xf32> -> vector<8x256xf32>
    %c0_17 = arith.constant 0 : index
    %c0_18 = arith.constant 0 : index
    %38 = vector.load %arg4[%c0_17, %c0_18] : memref<256x256xf32, #tpu.memory_space<vmem>>, vector<256x256xf32>
    %cst_19 = arith.constant dense<0.000000e+00> : vector<8x256xf32>
    %39 = tpu.matmul %37, %38, %cst_19 {dimension_numbers = #tpu.dot_dimension_numbers<[1], [0], [0], [1], [0, 0, 1, 1], [], []>} : vector<8x256xf32>, vector<256x256xf32>, vector<8x256xf32> -> vector<8x256xf32>
    %40 = vector.extract_strided_slice %39 {offsets = [0, 0], sizes = [8, 128], strides = [1, 1]} : vector<8x256xf32> to vector<8x128xf32>
    %41 = vector.extract_strided_slice %39 {offsets = [0, 128], sizes = [8, 128], strides = [1, 1]} : vector<8x256xf32> to vector<8x128xf32>
    %42 = arith.addf %41, %19 : vector<8x128xf32>
    %43 = math.tanh %42 : vector<8x128xf32>
    %44 = arith.mulf %15, %43 : vector<8x128xf32>
    %45 = arith.addf %44, %18 : vector<8x128xf32>
    %c96_i32_20 = arith.constant 96 : i32
    %46 = tpu.dynamic_rotate %45 by %c96_i32_20 dim 1 : vector<8x128xf32>, i32 -> vector<8x128xf32>
    %c64_i32_21 = arith.constant 64 : i32
    %47 = tpu.dynamic_rotate %45 by %c64_i32_21 dim 1 : vector<8x128xf32>, i32 -> vector<8x128xf32>
    %c32_i32_22 = arith.constant 32 : i32
    %48 = tpu.dynamic_rotate %45 by %c32_i32_22 dim 1 : vector<8x128xf32>, i32 -> vector<8x128xf32>
    %49 = arith.mulf %46, %20 : vector<8x128xf32>
    %50 = arith.mulf %45, %47 : vector<8x128xf32>
    %51 = arith.addf %49, %50 : vector<8x128xf32>
    %52 = math.tanh %51 : vector<8x128xf32>
    %53 = arith.mulf %48, %52 : vector<8x128xf32>
    %c1_i32 = arith.constant 1 : i32
    %c8_i32_23 = arith.constant 8 : i32
    %54 = arith.muli %c1_i32, %c8_i32_23 : i32
    %55 = tpu.assume_multiple %54, 8 : i32
    %56 = arith.index_cast %55 : i32 to index
    %c0_24 = arith.constant 0 : index
    %57 = vector.load %arg9[%56, %c0_24] : memref<64x128xf32, #tpu.memory_space<vmem>>, vector<8x128xf32>
    %58 = arith.addf %57, %40 : vector<8x128xf32>
    %59 = math.tanh %58 : vector<8x128xf32>
    %60 = arith.mulf %15, %59 : vector<8x128xf32>
    %61 = arith.addf %60, %18 : vector<8x128xf32>
    %c96_i32_25 = arith.constant 96 : i32
    %62 = tpu.dynamic_rotate %61 by %c96_i32_25 dim 1 : vector<8x128xf32>, i32 -> vector<8x128xf32>
    %c64_i32_26 = arith.constant 64 : i32
    %63 = tpu.dynamic_rotate %61 by %c64_i32_26 dim 1 : vector<8x128xf32>, i32 -> vector<8x128xf32>
    %c32_i32_27 = arith.constant 32 : i32
    %64 = tpu.dynamic_rotate %61 by %c32_i32_27 dim 1 : vector<8x128xf32>, i32 -> vector<8x128xf32>
    %65 = arith.mulf %62, %34 : vector<8x128xf32>
    %66 = arith.mulf %61, %63 : vector<8x128xf32>
    %67 = arith.addf %65, %66 : vector<8x128xf32>
    %68 = math.tanh %67 : vector<8x128xf32>
    %69 = arith.mulf %64, %68 : vector<8x128xf32>
    %70 = tpu.concatenate %69, %53 in 1 : vector<8x128xf32>, vector<8x128xf32> -> vector<8x256xf32>
    %c0_28 = arith.constant 0 : index
    %c0_29 = arith.constant 0 : index
    %71 = vector.load %arg4[%c0_28, %c0_29] : memref<256x256xf32, #tpu.memory_space<vmem>>, vector<256x256xf32>
    %cst_30 = arith.constant dense<0.000000e+00> : vector<8x256xf32>
    %72 = tpu.matmul %70, %71, %cst_30 {dimension_numbers = #tpu.dot_dimension_numbers<[1], [0], [0], [1], [0, 0, 1, 1], [], []>} : vector<8x256xf32>, vector<256x256xf32>, vector<8x256xf32> -> vector<8x256xf32>
    %73 = vector.extract_strided_slice %72 {offsets = [0, 0], sizes = [8, 128], strides = [1, 1]} : vector<8x256xf32> to vector<8x128xf32>
    %74 = vector.extract_strided_slice %72 {offsets = [0, 128], sizes = [8, 128], strides = [1, 1]} : vector<8x256xf32> to vector<8x128xf32>
    %75 = arith.addf %74, %19 : vector<8x128xf32>
    %76 = math.tanh %75 : vector<8x128xf32>
    %77 = arith.mulf %15, %76 : vector<8x128xf32>
    %78 = arith.addf %77, %18 : vector<8x128xf32>
    %c96_i32_31 = arith.constant 96 : i32
    %79 = tpu.dynamic_rotate %78 by %c96_i32_31 dim 1 : vector<8x128xf32>, i32 -> vector<8x128xf32>
    %c64_i32_32 = arith.constant 64 : i32
    %80 = tpu.dynamic_rotate %78 by %c64_i32_32 dim 1 : vector<8x128xf32>, i32 -> vector<8x128xf32>
    %c32_i32_33 = arith.constant 32 : i32
    %81 = tpu.dynamic_rotate %78 by %c32_i32_33 dim 1 : vector<8x128xf32>, i32 -> vector<8x128xf32>
    %82 = arith.mulf %79, %51 : vector<8x128xf32>
    %83 = arith.mulf %78, %80 : vector<8x128xf32>
    %84 = arith.addf %82, %83 : vector<8x128xf32>
    %85 = math.tanh %84 : vector<8x128xf32>
    %86 = arith.mulf %81, %85 : vector<8x128xf32>
    %c2_i32 = arith.constant 2 : i32
    %c8_i32_34 = arith.constant 8 : i32
    %87 = arith.muli %c2_i32, %c8_i32_34 : i32
    %88 = tpu.assume_multiple %87, 8 : i32
    %89 = arith.index_cast %88 : i32 to index
    %c0_35 = arith.constant 0 : index
    %90 = vector.load %arg9[%89, %c0_35] : memref<64x128xf32, #tpu.memory_space<vmem>>, vector<8x128xf32>
    %91 = arith.addf %90, %73 : vector<8x128xf32>
    %92 = math.tanh %91 : vector<8x128xf32>
    %93 = arith.mulf %15, %92 : vector<8x128xf32>
    %94 = arith.addf %93, %18 : vector<8x128xf32>
    %c96_i32_36 = arith.constant 96 : i32
    %95 = tpu.dynamic_rotate %94 by %c96_i32_36 dim 1 : vector<8x128xf32>, i32 -> vector<8x128xf32>
    %c64_i32_37 = arith.constant 64 : i32
    %96 = tpu.dynamic_rotate %94 by %c64_i32_37 dim 1 : vector<8x128xf32>, i32 -> vector<8x128xf32>
    %c32_i32_38 = arith.constant 32 : i32
    %97 = tpu.dynamic_rotate %94 by %c32_i32_38 dim 1 : vector<8x128xf32>, i32 -> vector<8x128xf32>
    %98 = arith.mulf %95, %67 : vector<8x128xf32>
    %99 = arith.mulf %94, %96 : vector<8x128xf32>
    %100 = arith.addf %98, %99 : vector<8x128xf32>
    %101 = math.tanh %100 : vector<8x128xf32>
    %102 = arith.mulf %97, %101 : vector<8x128xf32>
    %103 = tpu.concatenate %102, %86 in 1 : vector<8x128xf32>, vector<8x128xf32> -> vector<8x256xf32>
    %c0_39 = arith.constant 0 : index
    %c0_40 = arith.constant 0 : index
    %104 = vector.load %arg4[%c0_39, %c0_40] : memref<256x256xf32, #tpu.memory_space<vmem>>, vector<256x256xf32>
    %cst_41 = arith.constant dense<0.000000e+00> : vector<8x256xf32>
    %105 = tpu.matmul %103, %104, %cst_41 {dimension_numbers = #tpu.dot_dimension_numbers<[1], [0], [0], [1], [0, 0, 1, 1], [], []>} : vector<8x256xf32>, vector<256x256xf32>, vector<8x256xf32> -> vector<8x256xf32>
    %106 = vector.extract_strided_slice %105 {offsets = [0, 0], sizes = [8, 128], strides = [1, 1]} : vector<8x256xf32> to vector<8x128xf32>
    %107 = vector.extract_strided_slice %105 {offsets = [0, 128], sizes = [8, 128], strides = [1, 1]} : vector<8x256xf32> to vector<8x128xf32>
    %108 = arith.addf %107, %19 : vector<8x128xf32>
    %109 = math.tanh %108 : vector<8x128xf32>
    %110 = arith.mulf %15, %109 : vector<8x128xf32>
    %111 = arith.addf %110, %18 : vector<8x128xf32>
    %c96_i32_42 = arith.constant 96 : i32
    %112 = tpu.dynamic_rotate %111 by %c96_i32_42 dim 1 : vector<8x128xf32>, i32 -> vector<8x128xf32>
    %c64_i32_43 = arith.constant 64 : i32
    %113 = tpu.dynamic_rotate %111 by %c64_i32_43 dim 1 : vector<8x128xf32>, i32 -> vector<8x128xf32>
    %c32_i32_44 = arith.constant 32 : i32
    %114 = tpu.dynamic_rotate %111 by %c32_i32_44 dim 1 : vector<8x128xf32>, i32 -> vector<8x128xf32>
    %115 = arith.mulf %112, %84 : vector<8x128xf32>
    %116 = arith.mulf %111, %113 : vector<8x128xf32>
    %117 = arith.addf %115, %116 : vector<8x128xf32>
    %118 = math.tanh %117 : vector<8x128xf32>
    %119 = arith.mulf %114, %118 : vector<8x128xf32>
    %c3_i32 = arith.constant 3 : i32
    %c8_i32_45 = arith.constant 8 : i32
    %120 = arith.muli %c3_i32, %c8_i32_45 : i32
    %121 = tpu.assume_multiple %120, 8 : i32
    %122 = arith.index_cast %121 : i32 to index
    %c0_46 = arith.constant 0 : index
    %123 = vector.load %arg9[%122, %c0_46] : memref<64x128xf32, #tpu.memory_space<vmem>>, vector<8x128xf32>
    %124 = arith.addf %123, %106 : vector<8x128xf32>
    %125 = math.tanh %124 : vector<8x128xf32>
    %126 = arith.mulf %15, %125 : vector<8x128xf32>
    %127 = arith.addf %126, %18 : vector<8x128xf32>
    %c96_i32_47 = arith.constant 96 : i32
    %128 = tpu.dynamic_rotate %127 by %c96_i32_47 dim 1 : vector<8x128xf32>, i32 -> vector<8x128xf32>
    %c64_i32_48 = arith.constant 64 : i32
    %129 = tpu.dynamic_rotate %127 by %c64_i32_48 dim 1 : vector<8x128xf32>, i32 -> vector<8x128xf32>
    %c32_i32_49 = arith.constant 32 : i32
    %130 = tpu.dynamic_rotate %127 by %c32_i32_49 dim 1 : vector<8x128xf32>, i32 -> vector<8x128xf32>
    %131 = arith.mulf %128, %100 : vector<8x128xf32>
    %132 = arith.mulf %127, %129 : vector<8x128xf32>
    %133 = arith.addf %131, %132 : vector<8x128xf32>
    %134 = math.tanh %133 : vector<8x128xf32>
    %135 = arith.mulf %130, %134 : vector<8x128xf32>
    %136 = tpu.concatenate %135, %119 in 1 : vector<8x128xf32>, vector<8x128xf32> -> vector<8x256xf32>
    %c0_50 = arith.constant 0 : index
    %c0_51 = arith.constant 0 : index
    %137 = vector.load %arg4[%c0_50, %c0_51] : memref<256x256xf32, #tpu.memory_space<vmem>>, vector<256x256xf32>
    %cst_52 = arith.constant dense<0.000000e+00> : vector<8x256xf32>
    %138 = tpu.matmul %136, %137, %cst_52 {dimension_numbers = #tpu.dot_dimension_numbers<[1], [0], [0], [1], [0, 0, 1, 1], [], []>} : vector<8x256xf32>, vector<256x256xf32>, vector<8x256xf32> -> vector<8x256xf32>
    %139 = vector.extract_strided_slice %138 {offsets = [0, 0], sizes = [8, 128], strides = [1, 1]} : vector<8x256xf32> to vector<8x128xf32>
    %140 = vector.extract_strided_slice %138 {offsets = [0, 128], sizes = [8, 128], strides = [1, 1]} : vector<8x256xf32> to vector<8x128xf32>
    %141 = arith.addf %140, %19 : vector<8x128xf32>
    %142 = math.tanh %141 : vector<8x128xf32>
    %143 = arith.mulf %15, %142 : vector<8x128xf32>
    %144 = arith.addf %143, %18 : vector<8x128xf32>
    %c96_i32_53 = arith.constant 96 : i32
    %145 = tpu.dynamic_rotate %144 by %c96_i32_53 dim 1 : vector<8x128xf32>, i32 -> vector<8x128xf32>
    %c64_i32_54 = arith.constant 64 : i32
    %146 = tpu.dynamic_rotate %144 by %c64_i32_54 dim 1 : vector<8x128xf32>, i32 -> vector<8x128xf32>
    %c32_i32_55 = arith.constant 32 : i32
    %147 = tpu.dynamic_rotate %144 by %c32_i32_55 dim 1 : vector<8x128xf32>, i32 -> vector<8x128xf32>
    %148 = arith.mulf %145, %117 : vector<8x128xf32>
    %149 = arith.mulf %144, %146 : vector<8x128xf32>
    %150 = arith.addf %148, %149 : vector<8x128xf32>
    %151 = math.tanh %150 : vector<8x128xf32>
    %152 = arith.mulf %147, %151 : vector<8x128xf32>
    %c4_i32 = arith.constant 4 : i32
    %c8_i32_56 = arith.constant 8 : i32
    %153 = arith.muli %c4_i32, %c8_i32_56 : i32
    %154 = tpu.assume_multiple %153, 8 : i32
    %155 = arith.index_cast %154 : i32 to index
    %c0_57 = arith.constant 0 : index
    %156 = vector.load %arg9[%155, %c0_57] : memref<64x128xf32, #tpu.memory_space<vmem>>, vector<8x128xf32>
    %157 = arith.addf %156, %139 : vector<8x128xf32>
    %158 = math.tanh %157 : vector<8x128xf32>
    %159 = arith.mulf %15, %158 : vector<8x128xf32>
    %160 = arith.addf %159, %18 : vector<8x128xf32>
    %c96_i32_58 = arith.constant 96 : i32
    %161 = tpu.dynamic_rotate %160 by %c96_i32_58 dim 1 : vector<8x128xf32>, i32 -> vector<8x128xf32>
    %c64_i32_59 = arith.constant 64 : i32
    %162 = tpu.dynamic_rotate %160 by %c64_i32_59 dim 1 : vector<8x128xf32>, i32 -> vector<8x128xf32>
    %c32_i32_60 = arith.constant 32 : i32
    %163 = tpu.dynamic_rotate %160 by %c32_i32_60 dim 1 : vector<8x128xf32>, i32 -> vector<8x128xf32>
    %164 = arith.mulf %161, %133 : vector<8x128xf32>
    %165 = arith.mulf %160, %162 : vector<8x128xf32>
    %166 = arith.addf %164, %165 : vector<8x128xf32>
    %167 = math.tanh %166 : vector<8x128xf32>
    %168 = arith.mulf %163, %167 : vector<8x128xf32>
    %169 = tpu.concatenate %168, %152 in 1 : vector<8x128xf32>, vector<8x128xf32> -> vector<8x256xf32>
    %c0_61 = arith.constant 0 : index
    %c0_62 = arith.constant 0 : index
    %170 = vector.load %arg4[%c0_61, %c0_62] : memref<256x256xf32, #tpu.memory_space<vmem>>, vector<256x256xf32>
    %cst_63 = arith.constant dense<0.000000e+00> : vector<8x256xf32>
    %171 = tpu.matmul %169, %170, %cst_63 {dimension_numbers = #tpu.dot_dimension_numbers<[1], [0], [0], [1], [0, 0, 1, 1], [], []>} : vector<8x256xf32>, vector<256x256xf32>, vector<8x256xf32> -> vector<8x256xf32>
    %172 = vector.extract_strided_slice %171 {offsets = [0, 0], sizes = [8, 128], strides = [1, 1]} : vector<8x256xf32> to vector<8x128xf32>
    %173 = vector.extract_strided_slice %171 {offsets = [0, 128], sizes = [8, 128], strides = [1, 1]} : vector<8x256xf32> to vector<8x128xf32>
    %174 = arith.addf %173, %19 : vector<8x128xf32>
    %175 = math.tanh %174 : vector<8x128xf32>
    %176 = arith.mulf %15, %175 : vector<8x128xf32>
    %177 = arith.addf %176, %18 : vector<8x128xf32>
    %c96_i32_64 = arith.constant 96 : i32
    %178 = tpu.dynamic_rotate %177 by %c96_i32_64 dim 1 : vector<8x128xf32>, i32 -> vector<8x128xf32>
    %c64_i32_65 = arith.constant 64 : i32
    %179 = tpu.dynamic_rotate %177 by %c64_i32_65 dim 1 : vector<8x128xf32>, i32 -> vector<8x128xf32>
    %c32_i32_66 = arith.constant 32 : i32
    %180 = tpu.dynamic_rotate %177 by %c32_i32_66 dim 1 : vector<8x128xf32>, i32 -> vector<8x128xf32>
    %181 = arith.mulf %178, %150 : vector<8x128xf32>
    %182 = arith.mulf %177, %179 : vector<8x128xf32>
    %183 = arith.addf %181, %182 : vector<8x128xf32>
    %184 = math.tanh %183 : vector<8x128xf32>
    %185 = arith.mulf %180, %184 : vector<8x128xf32>
    %c5_i32 = arith.constant 5 : i32
    %c8_i32_67 = arith.constant 8 : i32
    %186 = arith.muli %c5_i32, %c8_i32_67 : i32
    %187 = tpu.assume_multiple %186, 8 : i32
    %188 = arith.index_cast %187 : i32 to index
    %c0_68 = arith.constant 0 : index
    %189 = vector.load %arg9[%188, %c0_68] : memref<64x128xf32, #tpu.memory_space<vmem>>, vector<8x128xf32>
    %190 = arith.addf %189, %172 : vector<8x128xf32>
    %191 = math.tanh %190 : vector<8x128xf32>
    %192 = arith.mulf %15, %191 : vector<8x128xf32>
    %193 = arith.addf %192, %18 : vector<8x128xf32>
    %c96_i32_69 = arith.constant 96 : i32
    %194 = tpu.dynamic_rotate %193 by %c96_i32_69 dim 1 : vector<8x128xf32>, i32 -> vector<8x128xf32>
    %c64_i32_70 = arith.constant 64 : i32
    %195 = tpu.dynamic_rotate %193 by %c64_i32_70 dim 1 : vector<8x128xf32>, i32 -> vector<8x128xf32>
    %c32_i32_71 = arith.constant 32 : i32
    %196 = tpu.dynamic_rotate %193 by %c32_i32_71 dim 1 : vector<8x128xf32>, i32 -> vector<8x128xf32>
    %197 = arith.mulf %194, %166 : vector<8x128xf32>
    %198 = arith.mulf %193, %195 : vector<8x128xf32>
    %199 = arith.addf %197, %198 : vector<8x128xf32>
    %200 = math.tanh %199 : vector<8x128xf32>
    %201 = arith.mulf %196, %200 : vector<8x128xf32>
    %202 = tpu.concatenate %201, %185 in 1 : vector<8x128xf32>, vector<8x128xf32> -> vector<8x256xf32>
    %c0_72 = arith.constant 0 : index
    %c0_73 = arith.constant 0 : index
    %203 = vector.load %arg4[%c0_72, %c0_73] : memref<256x256xf32, #tpu.memory_space<vmem>>, vector<256x256xf32>
    %cst_74 = arith.constant dense<0.000000e+00> : vector<8x256xf32>
    %204 = tpu.matmul %202, %203, %cst_74 {dimension_numbers = #tpu.dot_dimension_numbers<[1], [0], [0], [1], [0, 0, 1, 1], [], []>} : vector<8x256xf32>, vector<256x256xf32>, vector<8x256xf32> -> vector<8x256xf32>
    %205 = vector.extract_strided_slice %204 {offsets = [0, 0], sizes = [8, 128], strides = [1, 1]} : vector<8x256xf32> to vector<8x128xf32>
    %206 = vector.extract_strided_slice %204 {offsets = [0, 128], sizes = [8, 128], strides = [1, 1]} : vector<8x256xf32> to vector<8x128xf32>
    %207 = arith.addf %206, %19 : vector<8x128xf32>
    %208 = math.tanh %207 : vector<8x128xf32>
    %209 = arith.mulf %15, %208 : vector<8x128xf32>
    %210 = arith.addf %209, %18 : vector<8x128xf32>
    %c96_i32_75 = arith.constant 96 : i32
    %211 = tpu.dynamic_rotate %210 by %c96_i32_75 dim 1 : vector<8x128xf32>, i32 -> vector<8x128xf32>
    %c64_i32_76 = arith.constant 64 : i32
    %212 = tpu.dynamic_rotate %210 by %c64_i32_76 dim 1 : vector<8x128xf32>, i32 -> vector<8x128xf32>
    %c32_i32_77 = arith.constant 32 : i32
    %213 = tpu.dynamic_rotate %210 by %c32_i32_77 dim 1 : vector<8x128xf32>, i32 -> vector<8x128xf32>
    %214 = arith.mulf %211, %183 : vector<8x128xf32>
    %215 = arith.mulf %210, %212 : vector<8x128xf32>
    %216 = arith.addf %214, %215 : vector<8x128xf32>
    %217 = math.tanh %216 : vector<8x128xf32>
    %218 = arith.mulf %213, %217 : vector<8x128xf32>
    %c6_i32 = arith.constant 6 : i32
    %c8_i32_78 = arith.constant 8 : i32
    %219 = arith.muli %c6_i32, %c8_i32_78 : i32
    %220 = tpu.assume_multiple %219, 8 : i32
    %221 = arith.index_cast %220 : i32 to index
    %c0_79 = arith.constant 0 : index
    %222 = vector.load %arg9[%221, %c0_79] : memref<64x128xf32, #tpu.memory_space<vmem>>, vector<8x128xf32>
    %223 = arith.addf %222, %205 : vector<8x128xf32>
    %224 = math.tanh %223 : vector<8x128xf32>
    %225 = arith.mulf %15, %224 : vector<8x128xf32>
    %226 = arith.addf %225, %18 : vector<8x128xf32>
    %c96_i32_80 = arith.constant 96 : i32
    %227 = tpu.dynamic_rotate %226 by %c96_i32_80 dim 1 : vector<8x128xf32>, i32 -> vector<8x128xf32>
    %c64_i32_81 = arith.constant 64 : i32
    %228 = tpu.dynamic_rotate %226 by %c64_i32_81 dim 1 : vector<8x128xf32>, i32 -> vector<8x128xf32>
    %c32_i32_82 = arith.constant 32 : i32
    %229 = tpu.dynamic_rotate %226 by %c32_i32_82 dim 1 : vector<8x128xf32>, i32 -> vector<8x128xf32>
    %230 = arith.mulf %227, %199 : vector<8x128xf32>
    %231 = arith.mulf %226, %228 : vector<8x128xf32>
    %232 = arith.addf %230, %231 : vector<8x128xf32>
    %233 = math.tanh %232 : vector<8x128xf32>
    %234 = arith.mulf %229, %233 : vector<8x128xf32>
    %235 = tpu.concatenate %234, %218 in 1 : vector<8x128xf32>, vector<8x128xf32> -> vector<8x256xf32>
    %c0_83 = arith.constant 0 : index
    %c0_84 = arith.constant 0 : index
    %236 = vector.load %arg4[%c0_83, %c0_84] : memref<256x256xf32, #tpu.memory_space<vmem>>, vector<256x256xf32>
    %cst_85 = arith.constant dense<0.000000e+00> : vector<8x256xf32>
    %237 = tpu.matmul %235, %236, %cst_85 {dimension_numbers = #tpu.dot_dimension_numbers<[1], [0], [0], [1], [0, 0, 1, 1], [], []>} : vector<8x256xf32>, vector<256x256xf32>, vector<8x256xf32> -> vector<8x256xf32>
    %238 = vector.extract_strided_slice %237 {offsets = [0, 0], sizes = [8, 128], strides = [1, 1]} : vector<8x256xf32> to vector<8x128xf32>
    %239 = vector.extract_strided_slice %237 {offsets = [0, 128], sizes = [8, 128], strides = [1, 1]} : vector<8x256xf32> to vector<8x128xf32>
    %240 = arith.addf %239, %19 : vector<8x128xf32>
    %241 = math.tanh %240 : vector<8x128xf32>
    %242 = arith.mulf %15, %241 : vector<8x128xf32>
    %243 = arith.addf %242, %18 : vector<8x128xf32>
    %c96_i32_86 = arith.constant 96 : i32
    %244 = tpu.dynamic_rotate %243 by %c96_i32_86 dim 1 : vector<8x128xf32>, i32 -> vector<8x128xf32>
    %c64_i32_87 = arith.constant 64 : i32
    %245 = tpu.dynamic_rotate %243 by %c64_i32_87 dim 1 : vector<8x128xf32>, i32 -> vector<8x128xf32>
    %c32_i32_88 = arith.constant 32 : i32
    %246 = tpu.dynamic_rotate %243 by %c32_i32_88 dim 1 : vector<8x128xf32>, i32 -> vector<8x128xf32>
    %247 = arith.mulf %244, %216 : vector<8x128xf32>
    %248 = arith.mulf %243, %245 : vector<8x128xf32>
    %249 = arith.addf %247, %248 : vector<8x128xf32>
    %250 = math.tanh %249 : vector<8x128xf32>
    %251 = arith.mulf %246, %250 : vector<8x128xf32>
    %c7_i32 = arith.constant 7 : i32
    %c8_i32_89 = arith.constant 8 : i32
    %252 = arith.muli %c7_i32, %c8_i32_89 : i32
    %253 = tpu.assume_multiple %252, 8 : i32
    %254 = arith.index_cast %253 : i32 to index
    %c0_90 = arith.constant 0 : index
    %255 = vector.load %arg9[%254, %c0_90] : memref<64x128xf32, #tpu.memory_space<vmem>>, vector<8x128xf32>
    %256 = arith.addf %255, %238 : vector<8x128xf32>
    %257 = math.tanh %256 : vector<8x128xf32>
    %258 = arith.mulf %15, %257 : vector<8x128xf32>
    %259 = arith.addf %258, %18 : vector<8x128xf32>
    %c96_i32_91 = arith.constant 96 : i32
    %260 = tpu.dynamic_rotate %259 by %c96_i32_91 dim 1 : vector<8x128xf32>, i32 -> vector<8x128xf32>
    %c64_i32_92 = arith.constant 64 : i32
    %261 = tpu.dynamic_rotate %259 by %c64_i32_92 dim 1 : vector<8x128xf32>, i32 -> vector<8x128xf32>
    %c32_i32_93 = arith.constant 32 : i32
    %262 = tpu.dynamic_rotate %259 by %c32_i32_93 dim 1 : vector<8x128xf32>, i32 -> vector<8x128xf32>
    %263 = arith.mulf %260, %232 : vector<8x128xf32>
    %264 = arith.mulf %259, %261 : vector<8x128xf32>
    %265 = arith.addf %263, %264 : vector<8x128xf32>
    %266 = math.tanh %265 : vector<8x128xf32>
    %267 = arith.mulf %262, %266 : vector<8x128xf32>
    %268 = tpu.concatenate %267, %251 in 1 : vector<8x128xf32>, vector<8x128xf32> -> vector<8x256xf32>
    %c0_94 = arith.constant 0 : index
    %c0_95 = arith.constant 0 : index
    %269 = vector.load %arg4[%c0_94, %c0_95] : memref<256x256xf32, #tpu.memory_space<vmem>>, vector<256x256xf32>
    %cst_96 = arith.constant dense<0.000000e+00> : vector<8x256xf32>
    %270 = tpu.matmul %268, %269, %cst_96 {dimension_numbers = #tpu.dot_dimension_numbers<[1], [0], [0], [1], [0, 0, 1, 1], [], []>} : vector<8x256xf32>, vector<256x256xf32>, vector<8x256xf32> -> vector<8x256xf32>
    %271 = vector.extract_strided_slice %270 {offsets = [0, 0], sizes = [8, 128], strides = [1, 1]} : vector<8x256xf32> to vector<8x128xf32>
    %272 = vector.extract_strided_slice %270 {offsets = [0, 128], sizes = [8, 128], strides = [1, 1]} : vector<8x256xf32> to vector<8x128xf32>
    %273 = arith.addf %272, %19 : vector<8x128xf32>
    %274 = math.tanh %273 : vector<8x128xf32>
    %275 = arith.mulf %15, %274 : vector<8x128xf32>
    %276 = arith.addf %275, %18 : vector<8x128xf32>
    %c96_i32_97 = arith.constant 96 : i32
    %277 = tpu.dynamic_rotate %276 by %c96_i32_97 dim 1 : vector<8x128xf32>, i32 -> vector<8x128xf32>
    %c64_i32_98 = arith.constant 64 : i32
    %278 = tpu.dynamic_rotate %276 by %c64_i32_98 dim 1 : vector<8x128xf32>, i32 -> vector<8x128xf32>
    %c32_i32_99 = arith.constant 32 : i32
    %279 = tpu.dynamic_rotate %276 by %c32_i32_99 dim 1 : vector<8x128xf32>, i32 -> vector<8x128xf32>
    %280 = arith.mulf %277, %249 : vector<8x128xf32>
    %281 = arith.mulf %276, %278 : vector<8x128xf32>
    %282 = arith.addf %280, %281 : vector<8x128xf32>
    %283 = math.tanh %282 : vector<8x128xf32>
    %284 = arith.mulf %279, %283 : vector<8x128xf32>
    %c8_i32_100 = arith.constant 8 : i32
    %c0_101 = arith.constant 0 : index
    %c0_102 = arith.constant 0 : index
    %285 = vector.load %arg6[%c0_101, %c0_102] : memref<128x128xf32, #tpu.memory_space<vmem>>, vector<128x128xf32>
    %cst_103 = arith.constant dense<0.000000e+00> : vector<8x128xf32>
    %286 = tpu.matmul %284, %285, %cst_103 {dimension_numbers = #tpu.dot_dimension_numbers<[1], [0], [0], [1], [0, 0, 1, 1], [], []>} : vector<8x128xf32>, vector<128x128xf32>, vector<8x128xf32> -> vector<8x128xf32>
    %c0_104 = arith.constant 0 : index
    %c0_105 = arith.constant 0 : index
    %287 = vector.load %arg7[%c0_104, %c0_105] : memref<1x1xf32, #tpu.memory_space<vmem>>, vector<1x1xf32>
    %288 = vector.broadcast %287 : vector<1x1xf32> to vector<8x128xf32>
    %289 = arith.addf %286, %288 : vector<8x128xf32>
    %c0_106 = arith.constant 0 : index
    %c0_107 = arith.constant 0 : index
    %290 = vector.load %arg8[%c0_106, %c0_107] : memref<8x128xf32, #tpu.memory_space<vmem>>, vector<8x128xf32>
    tpu.vector_store %arg8[%c0_106, %c0_107], %289 {strides = array<i32>} : memref<8x128xf32, #tpu.memory_space<vmem>>, vector<8x128xf32>,
    return
  }
  func.func @transform_0(%arg0: i32) -> (i32, i32) {
    %c0_i32 = arith.constant 0 : i32
    %c0_i32_0 = arith.constant 0 : i32
    %c0_i32_1 = arith.constant 0 : i32
    return %c0_i32, %c0_i32_0 : i32, i32
  }
  func.func @transform_1(%arg0: i32) -> (i32, i32) {
    %c0_i32 = arith.constant 0 : i32
    %c0_i32_0 = arith.constant 0 : i32
    %c0_i32_1 = arith.constant 0 : i32
    return %c0_i32, %c0_i32_0 : i32, i32
  }
  func.func @transform_2(%arg0: i32) -> (i32, i32) {
    %c0_i32 = arith.constant 0 : i32
    %c0_i32_0 = arith.constant 0 : i32
    %c0_i32_1 = arith.constant 0 : i32
    return %c0_i32, %c0_i32_0 : i32, i32
  }
  func.func @transform_3(%arg0: i32) -> (i32, i32) {
    %c0_i32 = arith.constant 0 : i32
    %c0_i32_0 = arith.constant 0 : i32
    %c0_i32_1 = arith.constant 0 : i32
    return %c0_i32, %c0_i32_0 : i32, i32
  }
  func.func @transform_4(%arg0: i32) -> (i32, i32) {
    %c0_i32 = arith.constant 0 : i32
    %c0_i32_0 = arith.constant 0 : i32
    %c0_i32_1 = arith.constant 0 : i32
    return %c0_i32, %c0_i32_0 : i32, i32
  }
  func.func @transform_5(%arg0: i32) -> (i32, i32) {
    %c0_i32 = arith.constant 0 : i32
    %c0_i32_0 = arith.constant 0 : i32
    %c0_i32_1 = arith.constant 0 : i32
    return %c0_i32, %c0_i32_0 : i32, i32
  }
  func.func @transform_6(%arg0: i32) -> (i32, i32) {
    %c0_i32 = arith.constant 0 : i32
    %c0_i32_0 = arith.constant 0 : i32
    %c0_i32_1 = arith.constant 0 : i32
    return %c0_i32, %c0_i32_0 : i32, i32
  }
  func.func @transform_7(%arg0: i32) -> (i32, i32) {
    %c0_i32 = arith.constant 0 : i32
    %c0_i32_0 = arith.constant 0 : i32
    %c0_i32_1 = arith.constant 0 : i32
    return %c0_i32, %c0_i32_0 : i32, i32
  }
}

</mosaic_0001>

<bundles_post_ra>
// kernel: tpu_custom_call.1
= control target key start
LH: loop header
LB: loop body
LE: loop exit
PB: predicated region body
PF: predicated region fallthrough
CT: control target
= control target key end

     0   :  { %s2386_s0 = inlined_call_operand.vmem [shape: f32[64,4], index: 0, kind: input, shape index: {}]   ;;  %s2387_s1 = inlined_call_operand.vmem [shape: f32[4,128], index: 1, kind: input, shape index: {}]   ;;  %s2388_s2 = inlined_call_operand.vmem [shape: f32[1,128], index: 2, kind: input, shape index: {}]   ;;  %s2389_s3 = inlined_call_operand.hbm [shape: f32[256,256], index: 3, kind: input, shape index: {}]   ;;  %s2390_s4 = inlined_call_operand.vmem [shape: f32[8,128], index: 4, kind: input, shape index: {}]   ;;  %s2391_s5 = inlined_call_operand.hbm [shape: f32[128,128], index: 5, kind: input, shape index: {}]   ;;  %s2392_s6 = inlined_call_operand.<no memory space> [shape: f32[1,1], index: 6, kind: input, shape index: {}]   ;;  %s2393_s7 = inlined_call_operand.hbm [shape: f32[8,128], index: 7, kind: output, shape index: {}]  }
   0x1   :  { %v12_v0 = vstv %s2392_s6 }
   0x2   :  { %13 = vst [vmem:[#allocation3] sm:$0x1] %v12_v0 }
   0x3   :  { %14 = vsyncpa [#allocation5], 0 }
   0x4   :  { %15 = vsyncpa [#allocation8], 0 }
   0x5   :  { %16 = vsyncpa [#allocation6], 0  ;;  %s27_s28 = sshll.u32 %s2389_s3, 4  ;;  %s1374_s29 = smov [#allocation4]   ;;  %s28_s28 = int_to_ptr.hbm [resolvable:$true] %s27_s28 }
   0x6   :  { %s29_s30 = sshll.u32 %s1374_s29, 4  ;;  %s42_s10 = sshll.u32 %s2391_s5, 4  ;;  %s30_s30 = int_to_ptr.vmem [resolvable:$true] %s29_s30  ;;  %s43_s10 = int_to_ptr.hbm [resolvable:$true] %s42_s10 }
   0x7   :  { %s1375_s11 = smov 256   ;;  %s1376_s12 = smov 16  }
   0x8   :  { %35 = dma.hbm_to_vmem [thread:$0]  %s28_s28, 8192, %s30_s30, [#allocation5], %s1375_s11, %s1375_s11, %s1376_s12  }
   0x9   :  { %s1377_s6 = smov [#allocation7]   ;;  %s1378_s14 = smov 128  }
   0xa   :  { %s44_s13 = sshll.u32 %s1377_s6, 4  ;;  %s1379_s15 = smov 8   ;;  %s45_s13 = int_to_ptr.vmem [resolvable:$true] %s44_s13 }
   0xb   :  { %50 = dma.hbm_to_vmem [thread:$0]  %s43_s10, 2048, %s45_s13, [#allocation8], %s1378_s14, %s1378_s14, %s1379_s15  }
   0xc   :  { %1368 = dma.done.wait [#allocation5], 8192  }
   0xd   :  { %1369 = vsyncadd [#allocation5], 4294959104 }
   0xe   :  { %1370 = dma.done.wait [#allocation8], 2048  }
   0xf   :  { %1371 = vsyncadd [#allocation8], 4294965248  ;;  %vm99_vm0 = vcmask 1043456   ;;  %vm74_vm1 = vcmask 31744   ;;  %v69_v1 = vld [vmem:[%s2387_s1] sm:$0xf]  ;;  %v152_v6 = vlaneseq }
  0x10   :  { %v61_v2 = vld [vmem:[%s2386_s0] sm:$0xff]  ;;  %1141 = vmatpush.msk.msra.mxu0 %vm99_vm0, %v69_v1  ;;  %v1443_v3 = vld [vmem:[#allocation4 + $0xf0] sm:$0xff]  ;;  %v1467_v13 = vld [vmem:[#allocation4 + $0xe8] sm:$0xff]  ;;  %v1380_v31 = vmov 0.5   ;;  %s1381_s19 = smov 32   ;;  %s1382_s20 = smov 96  }
  0x11   :  { %1142 = vmatmul.msk.f32.vlgmr.msra.gmra.mxu0 %vm74_vm1, %v61_v2  ;;  %v1445_v4 = vld [vmem:[#allocation4 + $0xe0] sm:$0xff]  ;;  %240 = vmatpush.msra.mxu1 %v1443_v3  ;;  %v1448_v5 = vld [vmem:[#allocation4 + $0xd0] sm:$0xff]  ;;  %v1461_v11 = vld [vmem:[#allocation4 + $0xf8] sm:$0xff]  ;;  %2457 = vst [vmem:[#allocation13_spill] sm:$0xff] %v1467_v13  ;;  %v153_v15 = vand.u32 127, %v152_v6  ;;  %s1383_s21 = smov 64  }
  0x12   :  { %v1451_v7 = vld [vmem:[#allocation4 + $0x1f0] sm:$0xff]  ;;  %v1453_v8 = vld [vmem:[#allocation4 + $0x1e0] sm:$0xff]  ;;  %280 = vmatpush.msra.mxu3 %v1461_v11  ;;  %v1472_v14 = vld [vmem:[%s2388_s2] ss:$0 sm:$0xff]  ;;  %392 = vmatpush.msrb.mxu0 %v1461_v11  ;;  %s1130_s17 = sshll.u32 %s2393_s7, 4  ;;  %s1131_s17 = int_to_ptr.hbm [resolvable:$true] %s1130_s17 }
  0x13   :  { %241 = vmatpush.msra.mxu1 %v1445_v4  ;;  %v1455_v9 = vld [vmem:[#allocation4 + $0xc0] sm:$0xff]  ;;  %260 = vmatpush.msra.mxu2 %v1451_v7  ;;  %v1459_v10 = vld [vmem:[#allocation4 + $0x1d0] sm:$0xff]  ;;  %2458 = vst [vmem:[#allocation14_spill] sm:$0xff] %v1472_v14  ;;  %v1477_v17 = vld [vmem:[#allocation4 + $0xd8] sm:$0xff]  ;;  %vm154_vm2 = vcmp.ge.s32.totalorder %v153_v15, 64  ;;  %vm155_vm3 = vcmp.lt.s32.totalorder %v153_v15, 96 }
  0x14   :  { %v1463_v12 = vld [vmem:[#allocation4 + $0xb0] sm:$0xff]  ;;  %v1475_v16 = vld [vmem:[#allocation4 + $0x1c0] sm:$0xff]  ;;  %2459 = vst [vmem:[#allocation15_spill] sm:$0xff] %v1477_v17  ;;  %281 = vmatpush.msra.mxu3 %v1467_v13  ;;  %v1487_v20 = vld [vmem:[#allocation4 + $0xc8] sm:$0xff]  ;;  %393 = vmatpush.msrb.mxu0 %v1467_v13 }
  0x15   :  { %242 = vmatpush.msra.mxu1 %v1448_v5  ;;  %261 = vmatpush.msra.mxu2 %v1453_v8  ;;  %v1480_v18 = vld [vmem:[#allocation4 + $0xa0] sm:$0xff]  ;;  %v1485_v19 = vld [vmem:[#allocation4 + $0x1b0] sm:$0xff]  ;;  %2460 = vst [vmem:[#allocation16_spill] sm:$0xff] %v1487_v20  ;;  %v1498_v25 = vld [vmem:[#allocation4 + $0xb8] sm:$0xff] }
  0x16   :  { %v1490_v22 = vld [vmem:[#allocation4 + $0x90] sm:$0xff]  ;;  %282 = vmatpush.msra.mxu3 %v1477_v17  ;;  %v1496_v24 = vld [vmem:[#allocation4 + $0x1a0] sm:$0xff]  ;;  %2461 = vst [vmem:[#allocation17_spill] sm:$0xff] %v1498_v25  ;;  %394 = vmatpush.msrb.mxu0 %v1477_v17  ;;  %vm156_vm4 = vmand %vm154_vm2, %vm155_vm3 }
  0x17   :  { %243 = vmatpush.msra.mxu1 %v1455_v9  ;;  %262 = vmatpush.msra.mxu2 %v1459_v10  ;;  %v1501_v26 = vld [vmem:[#allocation4 + $0x80] sm:$0xff]  ;;  %v1506_v27 = vld [vmem:[#allocation4 + $0x190] sm:$0xff]  ;;  %v1520_v32 = vsel %vm156_vm4, 1.0, %v1380_v31  ;;  %v1526_v35 = vsel %vm156_vm4, 0.0, %v1380_v31  ;;  %v1552_v43 = vld [vmem:[#allocation4 + $0x1f8] sm:$0xff] }
  0x18   :  { %283 = vmatpush.msra.mxu3 %v1487_v20  ;;  %395 = vmatpush.msrb.mxu0 %v1487_v20  ;;  %v1509_v28 = vld [vmem:[#allocation4 + $0x70] sm:$0xff]  ;;  %v1514_v29 = vld [vmem:[#allocation4 + $0x180] sm:$0xff]  ;;  %2463 = vst [vmem:[#allocation19_spill] sm:$0xff] %v1520_v32  ;;  %v1560_v45 = vld [vmem:[#allocation4 + $0xa8] sm:$0xff] }
  0x19   :  { %244 = vmatpush.msra.mxu1 %v1463_v12  ;;  %263 = vmatpush.msra.mxu2 %v1475_v16  ;;  %v1517_v30 = vld [vmem:[#allocation4 + $0x60] sm:$0xff]  ;;  %v1523_v33 = vld [vmem:[#allocation4 + $0x50] sm:$0xff]  ;;  %2465 = vst [vmem:[#allocation21_spill] sm:$0xff] %v1526_v35  ;;  %v1562_v46 = vld [vmem:[#allocation4 + $0x1e8] sm:$0xff] }
  0x1a   :  { %284 = vmatpush.msra.mxu3 %v1498_v25  ;;  %396 = vmatpush.msrb.mxu0 %v1498_v25  ;;  %2462 = vst [vmem:[#allocation18_spill] sm:$0xff] %v1517_v30  ;;  %v1530_v37 = vld [vmem:[#allocation4 + $0x40] sm:$0xff]  ;;  %v1536_v39 = vld [vmem:[#allocation4 + $0x30] sm:$0xff]  ;;  %v1568_v48 = vld [vmem:[#allocation4 + $0x98] sm:$0xff] }
  0x1b   :  { %245 = vmatpush.msra.mxu1 %v1480_v18  ;;  %264 = vmatpush.msra.mxu2 %v1485_v19  ;;  %2464 = vst [vmem:[#allocation20_spill] sm:$0xff] %v1523_v33  ;;  %v1543_v40 = vld [vmem:[#allocation4 + $0x20] sm:$0xff]  ;;  %v1546_v41 = vld [vmem:[#allocation4 + $0x10] sm:$0xff]  ;;  %v1570_v49 = vld [vmem:[#allocation4 + $0x1d8] sm:$0xff] }
  0x1c   :  { %2466 = vst [vmem:[#allocation22_spill] sm:$0xff] %v1530_v37  ;;  %v1549_v42 = vld [vmem:[#allocation4] sm:$0xff]  ;;  %v1558_v44 = vld [vmem:[#allocation4 + $0x170] sm:$0xff]  ;;  %285 = vmatpush.msra.mxu3 %v1560_v45  ;;  %v1575_v51 = vld [vmem:[#allocation4 + $0x88] sm:$0xff]  ;;  %397 = vmatpush.msrb.mxu0 %v1560_v45 }
  0x1d   :  { %246 = vmatpush.msra.mxu1 %v1490_v22  ;;  %265 = vmatpush.msra.mxu2 %v1496_v24  ;;  %2467 = vst [vmem:[#allocation23_spill] sm:$0xff] %v1536_v39  ;;  %v1566_v47 = vld [vmem:[#allocation4 + $0x160] sm:$0xff]  ;;  %v1573_v50 = vld [vmem:[#allocation4 + $0x150] sm:$0xff]  ;;  %v1580_v52 = vld [vmem:[#allocation4 + $0x1c8] sm:$0xff] }
  0x1e   :  { %2468 = vst [vmem:[#allocation24_spill] sm:$0xff] %v1543_v40  ;;  %286 = vmatpush.msra.mxu3 %v1568_v48  ;;  %v1583_v53 = vld [vmem:[#allocation4 + $0x140] sm:$0xff]  ;;  %v1585_v54 = vld [vmem:[#allocation4 + $0x78] sm:$0xff]  ;;  %398 = vmatpush.msrb.mxu0 %v1568_v48  ;;  %v1597_v56 = vld [vmem:[#allocation4 + $0x130] sm:$0xff] }
  0x1f   :  { %247 = vmatpush.msra.mxu1 %v1501_v26  ;;  %266 = vmatpush.msra.mxu2 %v1506_v27  ;;  %2469 = vst [vmem:[#allocation25_spill] sm:$0xff] %v1546_v41  ;;  %v1590_v55 = vld [vmem:[#allocation4 + $0x1b8] sm:$0xff]  ;;  %v1599_v57 = vld [vmem:[#allocation4 + $0x68] sm:$0xff]  ;;  %v1607_v59 = vld [vmem:[#allocation4 + $0x120] sm:$0xff] }
  0x20   :  { %2470 = vst [vmem:[#allocation26_spill] sm:$0xff] %v1549_v42  ;;  %287 = vmatpush.msra.mxu3 %v1575_v51  ;;  %399 = vmatpush.msrb.mxu0 %v1575_v51  ;;  %v1601_v58 = vld [vmem:[#allocation4 + $0x1a8] sm:$0xff]  ;;  %v1609_v60 = vld [vmem:[#allocation4 + $0x58] sm:$0xff]  ;;  %v1617_v62 = vld [vmem:[#allocation4 + $0x110] sm:$0xff] }
  0x21   :  { %248 = vmatpush.msra.mxu1 %v1509_v28  ;;  %267 = vmatpush.msra.mxu2 %v1514_v29  ;;  %2471 = vst [vmem:[#allocation27_spill] sm:$0xff] %v1583_v53  ;;  %v1611_v61 = vld [vmem:[#allocation4 + $0x198] sm:$0xff]  ;;  %v1619_v63 = vld [vmem:[#allocation4 + $0x48] sm:$0xff]  ;;  %v1626_v1 = vld [vmem:[#allocation4 + $0x100] sm:$0xff] }
  0x22   :  { %288 = vmatpush.msra.mxu3 %v1585_v54  ;;  %2472 = vst [vmem:[#allocation28_spill] sm:$0xff] %v1597_v56  ;;  %400 = vmatpush.msrb.mxu0 %v1585_v54  ;;  %v1621_v0 = vld [vmem:[#allocation4 + $0x188] sm:$0xff]  ;;  %v1628_v2 = vld [vmem:[#allocation4 + $0x38] sm:$0xff] }
  0x23   :  { %249 = vmatpush.msra.mxu1 %v1517_v30  ;;  %268 = vmatpush.msra.mxu2 %v1558_v44  ;;  %2473 = vst [vmem:[#allocation29_spill] sm:$0xff] %v1599_v57  ;;  %v1630_v6 = vld [vmem:[#allocation4 + $0x178] sm:$0xff]  ;;  %v1633_v15 = vld [vmem:[#allocation4 + $0x28] sm:$0xff] }
  0x24   :  { %289 = vmatpush.msra.mxu3 %v1599_v57  ;;  %2474 = vst [vmem:[#allocation30_spill] sm:$0xff] %v1607_v59  ;;  %401 = vmatpush.msrb.mxu0 %v1599_v57  ;;  %v1642_v31 = vld [vmem:[#allocation4 + $0x18] sm:$0xff] }
  0x25   :  { %250 = vmatpush.msra.mxu1 %v1523_v33  ;;  %269 = vmatpush.msra.mxu2 %v1566_v47  ;;  %2475 = vst [vmem:[#allocation31_spill] sm:$0xff] %v1609_v60 }
  0x26   :  { %290 = vmatpush.msra.mxu3 %v1609_v60  ;;  %2476 = vst [vmem:[#allocation32_spill] sm:$0xff] %v1617_v62  ;;  %402 = vmatpush.msrb.mxu0 %v1609_v60 }
  0x27   :  { %251 = vmatpush.msra.mxu1 %v1530_v37  ;;  %270 = vmatpush.msra.mxu2 %v1573_v50  ;;  %2477 = vst [vmem:[#allocation33_spill] sm:$0xff] %v1619_v63 }
  0x28   :  { %291 = vmatpush.msra.mxu3 %v1619_v63  ;;  %2478 = vst [vmem:[#allocation34_spill] sm:$0xff] %v1626_v1  ;;  %403 = vmatpush.msrb.mxu0 %v1619_v63 }
  0x29   :  { %252 = vmatpush.msra.mxu1 %v1536_v39  ;;  %271 = vmatpush.msra.mxu2 %v1583_v53  ;;  %2479 = vst [vmem:[#allocation35_spill] sm:$0xff] %v1628_v2 }
  0x2a   :  { %2480 = vst [vmem:[#allocation36_spill] sm:$0xff] %v1633_v15  ;;  %292 = vmatpush.msra.mxu3 %v1628_v2  ;;  %404 = vmatpush.msrb.mxu0 %v1628_v2 }
  0x2b   :  { %253 = vmatpush.msra.mxu1 %v1543_v40  ;;  %272 = vmatpush.msra.mxu2 %v1597_v56  ;;  %2481 = vst [vmem:[#allocation37_spill] sm:$0xff] %v1642_v31 }
  0x2c   :  { %293 = vmatpush.msra.mxu3 %v1633_v15  ;;  %405 = vmatpush.msrb.mxu0 %v1633_v15 }
  0x2d   :  { %254 = vmatpush.msra.mxu1 %v1546_v41  ;;  %273 = vmatpush.msra.mxu2 %v1607_v59 }
  0x2e   :  { %294 = vmatpush.msra.mxu3 %v1642_v31  ;;  %406 = vmatpush.msrb.mxu0 %v1642_v31 }
  0x2f   :  { %255 = vmatpush.msra.mxu1 %v1549_v42  ;;  %274 = vmatpush.msra.mxu2 %v1617_v62 }
  0x31   :  { %300 = vmatpush.msrb.mxu1 %v1552_v43  ;;  %275 = vmatpush.msra.mxu2 %v1626_v1 }
  0x33   :  { %301 = vmatpush.msrb.mxu1 %v1562_v46  ;;  %352 = vmatpush.msrb.mxu2 %v1443_v3 }
  0x35   :  { %302 = vmatpush.msrb.mxu1 %v1570_v49  ;;  %353 = vmatpush.msrb.mxu2 %v1445_v4 }
  0x37   :  { %303 = vmatpush.msrb.mxu1 %v1580_v52  ;;  %354 = vmatpush.msrb.mxu2 %v1448_v5 }
  0x39   :  { %304 = vmatpush.msrb.mxu1 %v1590_v55  ;;  %355 = vmatpush.msrb.mxu2 %v1455_v9 }
  0x3b   :  { %305 = vmatpush.msrb.mxu1 %v1601_v58  ;;  %356 = vmatpush.msrb.mxu2 %v1463_v12 }
  0x3d   :  { %306 = vmatpush.msrb.mxu1 %v1611_v61  ;;  %357 = vmatpush.msrb.mxu2 %v1480_v18 }
  0x3f   :  { %307 = vmatpush.msrb.mxu1 %v1621_v0  ;;  %358 = vmatpush.msrb.mxu2 %v1490_v22 }
  0x41   :  { %308 = vmatpush.msrb.mxu1 %v1630_v6  ;;  %359 = vmatpush.msrb.mxu2 %v1501_v26 }
  0x43   :  { %360 = vmatpush.msrb.mxu2 %v1509_v28 }
  0x45   :  { %361 = vmatpush.msrb.mxu2 %v1517_v30 }
  0x47   :  { %362 = vmatpush.msrb.mxu2 %v1523_v33 }
  0x49   :  { %363 = vmatpush.msrb.mxu2 %v1530_v37 }
  0x4b   :  { %364 = vmatpush.msrb.mxu2 %v1536_v39 }
  0x4d   :  { %365 = vmatpush.msrb.mxu2 %v1543_v40 }
  0x4f   :  { %366 = vmatpush.msrb.mxu2 %v1546_v41 }
  0x51   :  { %367 = vmatpush.msrb.mxu2 %v1549_v42 }
  0x8e   :  { %v120_v21 = vpop.f32.mrf.mxu0 }
  0x8f   :  { %v121_v23 = vadd.f32 %v1472_v14, %v120_v21  ;;  %v1638_v21 = vld [vmem:[#allocation4 + $0x168] sm:$0xff]  ;;  %v1673_v14 = vld [vmem:[#allocation4 + $0x118] sm:$0xff] }
  0x90   :  { %309 = vmatpush.msrb.mxu1 %v1638_v21  ;;  %2486 = vst [vmem:[#allocation42_spill] sm:$0xff] %v1673_v14 }
  0x91   :  { %1166 = vtanh.f32 %v121_v23  ;;  %v2396_v23 = vmov 0.0  }
  0x92   :  { %276 = vmatmul.f32.vlgmr.msra.gmra.mxu2 %v2396_v23  ;;  %v1656_v23 = vld [vmem:[#allocation4 + $0x148] sm:$0xff] }
  0x93   :  { %2483 = vst [vmem:[#allocation39_spill] sm:$0xff] %v1656_v23  ;;  %464 = vmatpush.msra.mxu2 %v1443_v3 }
  0x95   :  { %465 = vmatpush.msra.mxu2 %v1445_v4 }
  0x97   :  { %v1167_v34 = vpop.eup %1166  ;;  %466 = vmatpush.msra.mxu2 %v1448_v5 }
  0x98   :  { %v163_v36 = vmul.f32 %v1167_v34, %v1520_v32  ;;  %v62_v34 = vld [vmem:[%s2386_s0 + $0x8] sm:$0xff] }
  0x99   :  { %1143 = vmatmul.msk.f32.gmra.mxu0 %vm74_vm1, %v62_v34  ;;  %v1664_v34 = vld [vmem:[#allocation4 + $0x138] sm:$0xff]  ;;  %v1667_v32 = vld [vmem:[#allocation4 + $0x128] sm:$0xff]  ;;  %467 = vmatpush.msra.mxu2 %v1455_v9 }
  0x9a   :  { %v1534_v38 = vadd.f32 %v163_v36, %v1526_v35  ;;  %v1648_v36 = vld [vmem:[#allocation4 + $0x158] sm:$0xff]  ;;  %v1652_v35 = vld [vmem:[#allocation4 + $0x8] sm:$0xff]  ;;  %2484 = vst [vmem:[#allocation40_spill] sm:$0xff] %v1664_v34 }
  0x9b   :  { %2482 = vst [vmem:[#allocation38_spill] sm:$0xff] %v1652_v35  ;;  %310 = vmatpush.msrb.mxu1 %v1648_v36  ;;  %295 = vmatpush.msra.mxu3 %v1652_v35 }
  0x9c   :  { %169 = vrot.lane.b32.xlu1 %v1534_v38, %s1381_s19  ;;  %165 = vrot.lane.b32.xlu0 %v1534_v38, %s1382_s20  ;;  %2485 = vst [vmem:[#allocation41_spill] sm:$0xff] %v1667_v32 }
  0x9d   :  { %311 = vmatpush.msrb.mxu1 %v1656_v23  ;;  %372 = vmatpush.msrb.mxu3 %v1451_v7  ;;  %v1679_v23 = vld [vmem:[#allocation4 + $0x108] sm:$0xff] }
  0x9e   :  { %407 = vmatpush.msrb.mxu0 %v1652_v35  ;;  %2487 = vst [vmem:[#allocation43_spill] sm:$0xff] %v1679_v23  ;;  %468 = vmatpush.msra.mxu2 %v1463_v12 }
  0x9f   :  { %312 = vmatpush.msrb.mxu1 %v1664_v34  ;;  %373 = vmatpush.msrb.mxu3 %v1453_v8 }
  0xa0   :  { %504 = vmatpush.msra.mxu0 %v1461_v11  ;;  %469 = vmatpush.msra.mxu2 %v1480_v18 }
  0xa1   :  { %313 = vmatpush.msrb.mxu1 %v1667_v32  ;;  %374 = vmatpush.msrb.mxu3 %v1459_v10 }
  0xa2   :  { %505 = vmatpush.msra.mxu0 %v1467_v13  ;;  %470 = vmatpush.msra.mxu2 %v1490_v22 }
  0xa3   :  { %314 = vmatpush.msrb.mxu1 %v1673_v14  ;;  %375 = vmatpush.msrb.mxu3 %v1475_v16 }
  0xa4   :  { %167 = vrot.lane.b32.xlu0 %v1534_v38, %s1383_s21  ;;  %506 = vmatpush.msra.mxu0 %v1477_v17 }
  0xa5   :  { %315 = vmatpush.msrb.mxu1 %v1679_v23  ;;  %376 = vmatpush.msrb.mxu3 %v1485_v19 }
  0xa6   :  { %507 = vmatpush.msra.mxu0 %v1487_v20  ;;  %471 = vmatpush.msra.mxu2 %v1501_v26 }
  0xa7   :  { %377 = vmatpush.msrb.mxu3 %v1496_v24 }
  0xa8   :  { %508 = vmatpush.msra.mxu0 %v1498_v25  ;;  %472 = vmatpush.msra.mxu2 %v1509_v28 }
  0xa9   :  { %378 = vmatpush.msrb.mxu3 %v1506_v27 }
  0xaa   :  { %509 = vmatpush.msra.mxu0 %v1560_v45  ;;  %473 = vmatpush.msra.mxu2 %v1517_v30 }
  0xab   :  { %379 = vmatpush.msrb.mxu3 %v1514_v29 }
  0xac   :  { %510 = vmatpush.msra.mxu0 %v1568_v48  ;;  %474 = vmatpush.msra.mxu2 %v1523_v33 }
  0xad   :  { %380 = vmatpush.msrb.mxu3 %v1558_v44 }
  0xae   :  { %511 = vmatpush.msra.mxu0 %v1575_v51  ;;  %475 = vmatpush.msra.mxu2 %v1530_v37 }
  0xaf   :  { %381 = vmatpush.msrb.mxu3 %v1566_v47 }
  0xb0   :  { %512 = vmatpush.msra.mxu0 %v1585_v54  ;;  %476 = vmatpush.msra.mxu2 %v1536_v39 }
  0xb1   :  { %382 = vmatpush.msrb.mxu3 %v1573_v50 }
  0xb2   :  { %513 = vmatpush.msra.mxu0 %v1599_v57  ;;  %477 = vmatpush.msra.mxu2 %v1543_v40 }
  0xb3   :  { %383 = vmatpush.msrb.mxu3 %v1583_v53 }
  0xb4   :  { %514 = vmatpush.msra.mxu0 %v1609_v60  ;;  %478 = vmatpush.msra.mxu2 %v1546_v41 }
  0xb5   :  { %384 = vmatpush.msrb.mxu3 %v1597_v56 }
  0xb6   :  { %515 = vmatpush.msra.mxu0 %v1619_v63  ;;  %479 = vmatpush.msra.mxu2 %v1549_v42  ;;  %v1797_v42 = vld [vmem:[%s2390_s4] sm:$0xff] }
  0xb7   :  { %385 = vmatpush.msrb.mxu3 %v1607_v59  ;;  %2492 = vst [vmem:[#allocation44_spill] sm:$0xff] %v1797_v42 }
  0xb8   :  { %516 = vmatpush.msra.mxu0 %v1628_v2 }
  0xb9   :  { %386 = vmatpush.msrb.mxu3 %v1617_v62 }
  0xba   :  { %517 = vmatpush.msra.mxu0 %v1633_v15 }
  0xbb   :  { %387 = vmatpush.msrb.mxu3 %v1626_v1 }
  0xbc   :  { %518 = vmatpush.msra.mxu0 %v1642_v31 }
  0xbe   :  { %519 = vmatpush.msra.mxu0 %v1652_v35 }
 0x10e   :  { %v166_v32 = vpop.permute.xlu0 %165 }
 0x10f   :  { %v171_v20 = vmul.f32 0.0, %v166_v32  ;;  %v2488_v32 = vmov 0.0  }
 0x116   :  { %v168_v17 = vpop.permute.xlu0 %167 }
 0x117   :  { %v172_v13 = vmul.f32 %v168_v17, %v1534_v38  ;;  %v170_v17 = vpop.permute.xlu1 %169  ;;  %v2489_v38 = vld [vmem:[#allocation39_spill] sm:$0xff] }
 0x119   :  { %v1708_v25 = vadd.f32 %v172_v13, %v171_v20 }
 0x11b   :  { %1168 = vtanh.f32 %v1708_v25 }
 0x121   :  { %v1169_v13 = vpop.eup %1168 }
 0x122   :  { %v175_v20 = vmul.f32 %v1169_v13, %v170_v17  ;;  %v2490_v13 = vld [vmem:[#allocation41_spill] sm:$0xff]  ;;  %v123_v17 = vpop.f32.mrf.mxu0 }
 0x124   :  { %256 = vmatmul.f32.vlgmr.msra.gmra.mxu1 %v175_v20  ;;  %296 = vmatmul.f32.vlgmr.msra.gmra.mxu3 %v175_v20  ;;  %v277_v20 = vpop.f32.mrf.mxu2 }
 0x125   :  { %412 = vmatpush.msra.mxu1 %v1552_v43  ;;  %484 = vmatpush.msra.mxu3 %v1451_v7 }
 0x127   :  { %413 = vmatpush.msra.mxu1 %v1562_v46  ;;  %485 = vmatpush.msra.mxu3 %v1453_v8 }
 0x129   :  { %414 = vmatpush.msra.mxu1 %v1570_v49  ;;  %486 = vmatpush.msra.mxu3 %v1459_v10 }
 0x12b   :  { %415 = vmatpush.msra.mxu1 %v1580_v52  ;;  %487 = vmatpush.msra.mxu3 %v1475_v16 }
 0x12c   :  { %316 = vmatmul.f32.vlgmr.msrb.gmra.mxu1 %v2488_v32  ;;  %v2491_v32 = vld [vmem:[#allocation14_spill] sm:$0xff] }
 0x12d   :  { %416 = vmatpush.msra.mxu1 %v1590_v55  ;;  %488 = vmatpush.msra.mxu3 %v1485_v19 }
 0x12f   :  { %417 = vmatpush.msra.mxu1 %v1601_v58  ;;  %489 = vmatpush.msra.mxu3 %v1496_v24 }
 0x131   :  { %418 = vmatpush.msra.mxu1 %v1611_v61  ;;  %490 = vmatpush.msra.mxu3 %v1506_v27 }
 0x133   :  { %419 = vmatpush.msra.mxu1 %v1621_v0  ;;  %491 = vmatpush.msra.mxu3 %v1514_v29 }
 0x135   :  { %420 = vmatpush.msra.mxu1 %v1630_v6  ;;  %492 = vmatpush.msra.mxu3 %v1558_v44 }
 0x137   :  { %421 = vmatpush.msra.mxu1 %v1638_v21  ;;  %493 = vmatpush.msra.mxu3 %v1566_v47 }
 0x139   :  { %422 = vmatpush.msra.mxu1 %v1648_v36  ;;  %494 = vmatpush.msra.mxu3 %v1573_v50 }
 0x13b   :  { %423 = vmatpush.msra.mxu1 %v2489_v38  ;;  %495 = vmatpush.msra.mxu3 %v1583_v53 }
 0x13d   :  { %424 = vmatpush.msra.mxu1 %v1664_v34  ;;  %496 = vmatpush.msra.mxu3 %v1597_v56 }
 0x13f   :  { %425 = vmatpush.msra.mxu1 %v2490_v13  ;;  %497 = vmatpush.msra.mxu3 %v1607_v59 }
 0x141   :  { %426 = vmatpush.msra.mxu1 %v1673_v14  ;;  %498 = vmatpush.msra.mxu3 %v1617_v62 }
 0x143   :  { %427 = vmatpush.msra.mxu1 %v1679_v23  ;;  %499 = vmatpush.msra.mxu3 %v1626_v1  ;;  %v124_v1 = vadd.f32 %v2491_v32, %v123_v17 }
 0x145   :  { %524 = vmatpush.msrb.mxu1 %v1552_v43 }
 0x147   :  { %525 = vmatpush.msrb.mxu1 %v1562_v46 }
 0x149   :  { %526 = vmatpush.msrb.mxu1 %v1570_v49 }
 0x14b   :  { %527 = vmatpush.msrb.mxu1 %v1580_v52 }
 0x14d   :  { %528 = vmatpush.msrb.mxu1 %v1590_v55 }
 0x14f   :  { %529 = vmatpush.msrb.mxu1 %v1601_v58 }
 0x151   :  { %530 = vmatpush.msrb.mxu1 %v1611_v61 }
 0x153   :  { %531 = vmatpush.msrb.mxu1 %v1621_v0 }
 0x155   :  { %532 = vmatpush.msrb.mxu1 %v1630_v6 }
 0x157   :  { %533 = vmatpush.msrb.mxu1 %v1638_v21 }
 0x159   :  { %534 = vmatpush.msrb.mxu1 %v1648_v36 }
 0x15b   :  { %535 = vmatpush.msrb.mxu1 %v2489_v38 }
 0x15d   :  { %536 = vmatpush.msrb.mxu1 %v1664_v34 }
 0x15f   :  { %537 = vmatpush.msrb.mxu1 %v2490_v13 }
 0x161   :  { %538 = vmatpush.msrb.mxu1 %v1673_v14  ;;  %v63_v14 = vld [vmem:[%s2386_s0 + $0x10] sm:$0xff] }
 0x162   :  { %1144 = vmatmul.msk.f32.gmra.mxu0 %vm74_vm1, %v63_v14 }
 0x163   :  { %539 = vmatpush.msrb.mxu1 %v1679_v23 }
 0x1a1   :  { %v257_v62 = vpop.f32.mrf.mxu1 }
 0x1a2   :  { %v278_v59 = vadd.f32 %v277_v20, %v257_v62  ;;  %v2493_v62 = vld [vmem:[#allocation19_spill] sm:$0xff] }
 0x1a3   :  { %v64_v20 = vld [vmem:[%s2386_s0 + $0x18] sm:$0xff] }
 0x1a4   :  { %v337_v56 = vadd.f32 %v278_v59, %v124_v1  ;;  %1145 = vmatmul.msk.f32.gmra.mxu0 %vm74_vm1, %v64_v20 }
 0x1a6   :  { %1170 = vtanh.f32 %v337_v56  ;;  %v2494_v56 = vld [vmem:[#allocation21_spill] sm:$0xff] }
 0x1a7   :  { %v297_v35 = vpop.f32.mrf.mxu3 }
 0x1a9   :  { %v317_v34 = vpop.f32.mrf.mxu1 }
 0x1aa   :  { %v318_v23 = vadd.f32 %v317_v34, %v297_v35  ;;  %v66_v34 = vld [vmem:[%s2386_s0 + $0x28] sm:$0xff] }
 0x1ac   :  { %v1171_v13 = vpop.eup %1170  ;;  %v320_v17 = vadd.f32 %v318_v23, %v1797_v42  ;;  %v65_v23 = vld [vmem:[%s2386_s0 + $0x20] sm:$0xff] }
 0x1ad   :  { %v339_v59 = vmul.f32 %v1171_v13, %v2493_v62  ;;  %1146 = vmatmul.msk.f32.gmra.mxu0 %vm74_vm1, %v65_v23  ;;  %v67_v13 = vld [vmem:[%s2386_s0 + $0x30] sm:$0xff] }
 0x1ae   :  { %1172 = vtanh.f32 %v320_v17 }
 0x1af   :  { %v340_v1 = vadd.f32 %v339_v59, %v2494_v56 }
 0x1b1   :  { %343 = vrot.lane.b32.xlu0 %v340_v1, %s1383_s21 }
 0x1b4   :  { %v1173_v32 = vpop.eup %1172 }
 0x1b5   :  { %v322_v35 = vmul.f32 %v1173_v32, %v2493_v62  ;;  %1147 = vmatmul.msk.f32.gmra.mxu0 %vm74_vm1, %v66_v34  ;;  %v68_v32 = vld [vmem:[%s2386_s0 + $0x38] sm:$0xff] }
 0x1b7   :  { %v323_v14 = vadd.f32 %v322_v35, %v2494_v56 }
 0x1b9   :  { %326 = vrot.lane.b32.xlu2 %v323_v14, %s1383_s21  ;;  %324 = vrot.lane.b32.xlu1 %v323_v14, %s1382_s20 }
 0x1bd   :  { %1148 = vmatmul.msk.f32.gmra.mxu0 %vm74_vm1, %v67_v13 }
 0x1c1   :  { %328 = vrot.lane.b32.xlu1 %v323_v14, %s1381_s19  ;;  %341 = vrot.lane.b32.xlu2 %v340_v1, %s1382_s20 }
 0x1c5   :  { %1149 = vmatmul.msk.f32.gmra.mxu0 %vm74_vm1, %v68_v32  ;;  %v2496_v32 = vld [vmem:[#allocation15_spill] sm:$0xff] }
 0x1c9   :  { %345 = vrot.lane.b32.xlu2 %v340_v1, %s1381_s19 }
 0x213   :  { %v327_v17 = vpop.permute.xlu2 %326 }
 0x214   :  { %v331_v62 = vmul.f32 %v327_v17, %v323_v14  ;;  %v2500_v17 = vld [vmem:[#allocation27_spill] sm:$0xff] }
 0x21b   :  { %v342_v59 = vpop.permute.xlu2 %341 }
 0x21c   :  { %v347_v35 = vmul.f32 %v342_v59, %v1708_v25  ;;  %v2495_v25 = vld [vmem:[#allocation13_spill] sm:$0xff]  ;;  %v2501_v59 = vld [vmem:[#allocation39_spill] sm:$0xff] }
 0x223   :  { %v344_v20 = vpop.permute.xlu0 %343  ;;  %v346_v38 = vpop.permute.xlu2 %345 }
 0x224   :  { %v348_v23 = vmul.f32 %v344_v20, %v340_v1  ;;  %v2502_v20 = vld [vmem:[#allocation26_spill] sm:$0xff] }
 0x226   :  { %v1835_v56 = vadd.f32 %v348_v23, %v347_v35  ;;  %v2503_v35 = vld [vmem:[#allocation38_spill] sm:$0xff]  ;;  %v2504_v23 = vld [vmem:[#allocation28_spill] sm:$0xff] }
 0x228   :  { %1174 = vtanh.f32 %v1835_v56 }
 0x22b   :  { %v325_v34 = vpop.permute.xlu1 %324 }
 0x22c   :  { %v330_v42 = vmul.f32 0.0, %v325_v34  ;;  %v2505_v34 = vld [vmem:[#allocation40_spill] sm:$0xff] }
 0x22e   :  { %v1175_v13 = vpop.eup %1174  ;;  %v1838_v53 = vadd.f32 %v331_v62, %v330_v42  ;;  %v2499_v62 = vld [vmem:[#allocation37_spill] sm:$0xff] }
 0x22f   :  { %v351_v31 = vmul.f32 %v1175_v13, %v346_v38  ;;  %v2497_v38 = vld [vmem:[#allocation16_spill] sm:$0xff]  ;;  %v2506_v13 = vld [vmem:[#allocation30_spill] sm:$0xff] }
 0x230   :  { %1176 = vtanh.f32 %v1838_v53 }
 0x231   :  { %368 = vmatmul.f32.vlgmr.msrb.gmra.mxu2 %v351_v31  ;;  %408 = vmatmul.f32.vlgmr.msrb.gmra.mxu0 %v351_v31  ;;  %v2498_v31 = vld [vmem:[#allocation17_spill] sm:$0xff] }
 0x232   :  { %576 = vmatpush.msrb.mxu2 %v1443_v3  ;;  %616 = vmatpush.msrb.mxu0 %v1461_v11 }
 0x233   :  { %v329_v14 = vpop.permute.xlu1 %328 }
 0x234   :  { %577 = vmatpush.msrb.mxu2 %v1445_v4  ;;  %617 = vmatpush.msrb.mxu0 %v2495_v25 }
 0x236   :  { %v1177_v1 = vpop.eup %1176  ;;  %578 = vmatpush.msrb.mxu2 %v1448_v5  ;;  %618 = vmatpush.msrb.mxu0 %v2496_v32 }
 0x237   :  { %v334_v42 = vmul.f32 %v1177_v1, %v329_v14  ;;  %v2507_v1 = vld [vmem:[#allocation41_spill] sm:$0xff]  ;;  %v2508_v14 = vld [vmem:[#allocation32_spill] sm:$0xff] }
 0x238   :  { %579 = vmatpush.msrb.mxu2 %v1455_v9  ;;  %619 = vmatpush.msrb.mxu0 %v2497_v38 }
 0x239   :  { %388 = vmatmul.f32.vlgmr.msrb.gmra.mxu3 %v334_v42  ;;  %428 = vmatmul.f32.vlgmr.msra.gmra.mxu1 %v334_v42  ;;  %v2509_v42 = vld [vmem:[#allocation42_spill] sm:$0xff] }
 0x23a   :  { %596 = vmatpush.msrb.mxu3 %v1451_v7  ;;  %636 = vmatpush.msra.mxu1 %v1552_v43 }
 0x23b   :  { %580 = vmatpush.msrb.mxu2 %v1463_v12  ;;  %620 = vmatpush.msrb.mxu0 %v2498_v31 }
 0x23c   :  { %597 = vmatpush.msrb.mxu3 %v1453_v8  ;;  %637 = vmatpush.msra.mxu1 %v1562_v46 }
 0x23d   :  { %581 = vmatpush.msrb.mxu2 %v1480_v18  ;;  %621 = vmatpush.msrb.mxu0 %v1560_v45 }
 0x23e   :  { %598 = vmatpush.msrb.mxu3 %v1459_v10  ;;  %638 = vmatpush.msra.mxu1 %v1570_v49 }
 0x23f   :  { %582 = vmatpush.msrb.mxu2 %v1490_v22  ;;  %622 = vmatpush.msrb.mxu0 %v1568_v48 }
 0x240   :  { %599 = vmatpush.msrb.mxu3 %v1475_v16  ;;  %639 = vmatpush.msra.mxu1 %v1580_v52 }
 0x241   :  { %583 = vmatpush.msrb.mxu2 %v1501_v26  ;;  %623 = vmatpush.msrb.mxu0 %v1575_v51 }
 0x242   :  { %600 = vmatpush.msrb.mxu3 %v1485_v19  ;;  %640 = vmatpush.msra.mxu1 %v1590_v55 }
 0x243   :  { %584 = vmatpush.msrb.mxu2 %v1509_v28  ;;  %624 = vmatpush.msrb.mxu0 %v1585_v54 }
 0x244   :  { %601 = vmatpush.msrb.mxu3 %v1496_v24  ;;  %641 = vmatpush.msra.mxu1 %v1601_v58 }
 0x245   :  { %585 = vmatpush.msrb.mxu2 %v1517_v30  ;;  %625 = vmatpush.msrb.mxu0 %v1599_v57  ;;  %v2520_v30 = vld [vmem:[#allocation21_spill] sm:$0xff] }
 0x246   :  { %602 = vmatpush.msrb.mxu3 %v1506_v27  ;;  %642 = vmatpush.msra.mxu1 %v1611_v61 }
 0x247   :  { %586 = vmatpush.msrb.mxu2 %v1523_v33  ;;  %626 = vmatpush.msrb.mxu0 %v1609_v60 }
 0x248   :  { %603 = vmatpush.msrb.mxu3 %v1514_v29  ;;  %643 = vmatpush.msra.mxu1 %v1621_v0 }
 0x249   :  { %587 = vmatpush.msrb.mxu2 %v1530_v37  ;;  %627 = vmatpush.msrb.mxu0 %v1619_v63 }
 0x24a   :  { %604 = vmatpush.msrb.mxu3 %v1558_v44  ;;  %644 = vmatpush.msra.mxu1 %v1630_v6 }
 0x24b   :  { %588 = vmatpush.msrb.mxu2 %v1536_v39  ;;  %628 = vmatpush.msrb.mxu0 %v1628_v2 }
 0x24c   :  { %605 = vmatpush.msrb.mxu3 %v1566_v47  ;;  %645 = vmatpush.msra.mxu1 %v1638_v21 }
 0x24d   :  { %589 = vmatpush.msrb.mxu2 %v1543_v40  ;;  %629 = vmatpush.msrb.mxu0 %v1633_v15  ;;  %v126_v15 = vpop.f32.mrf.mxu0 }
 0x24e   :  { %606 = vmatpush.msrb.mxu3 %v1573_v50  ;;  %646 = vmatpush.msra.mxu1 %v1648_v36 }
 0x24f   :  { %590 = vmatpush.msrb.mxu2 %v1546_v41  ;;  %630 = vmatpush.msrb.mxu0 %v2499_v62  ;;  %v2510_v62 = vld [vmem:[#allocation34_spill] sm:$0xff]  ;;  %v2511_v41 = vld [vmem:[#allocation43_spill] sm:$0xff] }
 0x250   :  { %607 = vmatpush.msrb.mxu3 %v2500_v17  ;;  %647 = vmatpush.msra.mxu1 %v2501_v59 }
 0x251   :  { %591 = vmatpush.msrb.mxu2 %v2502_v20  ;;  %631 = vmatpush.msrb.mxu0 %v2503_v35 }
 0x252   :  { %608 = vmatpush.msrb.mxu3 %v2504_v23  ;;  %648 = vmatpush.msra.mxu1 %v2505_v34 }
 0x254   :  { %609 = vmatpush.msrb.mxu3 %v2506_v13  ;;  %649 = vmatpush.msra.mxu1 %v2507_v1 }
 0x255   :  { %v1905_v20 = vpop.f32.mrf.mxu0 }
 0x256   :  { %610 = vmatpush.msrb.mxu3 %v2508_v14  ;;  %650 = vmatpush.msra.mxu1 %v2509_v42  ;;  %2512 = vst [vmem:[#allocation13_spill] sm:$0xff] %v1905_v20  ;;  %v2517_v14 = vld [vmem:[#allocation44_spill] sm:$0xff] }
 0x258   :  { %611 = vmatpush.msrb.mxu3 %v2510_v62  ;;  %651 = vmatpush.msra.mxu1 %v2511_v41  ;;  %v2518_v41 = vld [vmem:[#allocation14_spill] sm:$0xff] }
 0x259   :  { %v127_v1 = vadd.f32 %v2518_v41, %v126_v15 }
 0x25d   :  { %v1907_v35 = vpop.f32.mrf.mxu0 }
 0x25e   :  { %2513 = vst [vmem:[#allocation15_spill] sm:$0xff] %v1907_v35  ;;  %v2519_v35 = vld [vmem:[#allocation19_spill] sm:$0xff] }
 0x265   :  { %v1909_v40 = vpop.f32.mrf.mxu0 }
 0x266   :  { %2514 = vst [vmem:[#allocation16_spill] sm:$0xff] %v1909_v40 }
 0x26d   :  { %v1911_v2 = vpop.f32.mrf.mxu0 }
 0x26e   :  { %2515 = vst [vmem:[#allocation17_spill] sm:$0xff] %v1911_v2 }
 0x275   :  { %v1913_v39 = vpop.f32.mrf.mxu0 }
 0x276   :  { %2516 = vst [vmem:[#allocation27_spill] sm:$0xff] %v1913_v39 }
 0x2ae   :  { %v409_v63 = vpop.f32.mrf.mxu0 }
 0x2b4   :  { %v369_v62 = vpop.f32.mrf.mxu2 }
 0x2b6   :  { %v429_v37 = vpop.f32.mrf.mxu1 }
 0x2b7   :  { %v430_v60 = vadd.f32 %v429_v37, %v409_v63 }
 0x2b9   :  { %v432_v42 = vadd.f32 %v430_v60, %v2517_v14 }
 0x2bb   :  { %1178 = vtanh.f32 %v432_v42 }
 0x2bc   :  { %v389_v33 = vpop.f32.mrf.mxu3 }
 0x2bd   :  { %v390_v57 = vadd.f32 %v389_v33, %v369_v62 }
 0x2bf   :  { %v449_v20 = vadd.f32 %v390_v57, %v127_v1 }
 0x2c1   :  { %v1179_v13 = vpop.eup %1178  ;;  %1180 = vtanh.f32 %v449_v20 }
 0x2c2   :  { %v434_v40 = vmul.f32 %v1179_v13, %v2519_v35 }
 0x2c4   :  { %v435_v2 = vadd.f32 %v434_v40, %v2520_v30 }
 0x2c6   :  { %438 = vrot.lane.b32.xlu1 %v435_v2, %s1383_s21  ;;  %436 = vrot.lane.b32.xlu0 %v435_v2, %s1382_s20 }
 0x2c7   :  { %v1181_v37 = vpop.eup %1180 }
 0x2c8   :  { %v451_v60 = vmul.f32 %v1181_v37, %v2519_v35 }
 0x2ca   :  { %v452_v63 = vadd.f32 %v451_v60, %v2520_v30 }
 0x2cc   :  { %453 = vrot.lane.b32.xlu2 %v452_v63, %s1382_s20 }
 0x2ce   :  { %440 = vrot.lane.b32.xlu1 %v435_v2, %s1381_s19  ;;  %455 = vrot.lane.b32.xlu0 %v452_v63, %s1383_s21 }
 0x2d4   :  { %457 = vrot.lane.b32.xlu2 %v452_v63, %s1381_s19 }
 0x326   :  { %v454_v62 = vpop.permute.xlu2 %453 }
 0x327   :  { %v459_v13 = vmul.f32 %v454_v62, %v1835_v56 }
 0x338   :  { %v439_v33 = vpop.permute.xlu1 %438  ;;  %v437_v41 = vpop.permute.xlu0 %436 }
 0x339   :  { %v443_v40 = vmul.f32 %v439_v33, %v435_v2  ;;  %v442_v57 = vmul.f32 %v437_v41, %v1838_v53  ;;  %v458_v2 = vpop.permute.xlu2 %457 }
 0x33b   :  { %v1928_v15 = vadd.f32 %v443_v40, %v442_v57 }
 0x33d   :  { %1182 = vtanh.f32 %v1928_v15 }
 0x340   :  { %v456_v20 = vpop.permute.xlu0 %455  ;;  %v441_v37 = vpop.permute.xlu1 %440 }
 0x341   :  { %v460_v1 = vmul.f32 %v456_v20, %v452_v63 }
 0x343   :  { %v1183_v42 = vpop.eup %1182  ;;  %v1932_v60 = vadd.f32 %v460_v1, %v459_v13 }
 0x344   :  { %v446_v39 = vmul.f32 %v1183_v42, %v441_v37 }
 0x345   :  { %1184 = vtanh.f32 %v1932_v60 }
 0x346   :  { %500 = vmatmul.f32.vlgmr.msra.gmra.mxu3 %v446_v39  ;;  %540 = vmatmul.f32.vlgmr.msrb.gmra.mxu1 %v446_v39  ;;  %v2539_v39 = vld [vmem:[#allocation26_spill] sm:$0xff] }
 0x347   :  { %708 = vmatpush.msra.mxu3 %v1451_v7  ;;  %748 = vmatpush.msrb.mxu1 %v1552_v43  ;;  %v2524_v7 = vld [vmem:[#allocation41_spill] sm:$0xff] }
 0x349   :  { %709 = vmatpush.msra.mxu3 %v1453_v8  ;;  %749 = vmatpush.msrb.mxu1 %v1562_v46  ;;  %v2525_v8 = vld [vmem:[#allocation20_spill] sm:$0xff] }
 0x34b   :  { %v1185_v53 = vpop.eup %1184  ;;  %710 = vmatpush.msra.mxu3 %v1459_v10  ;;  %750 = vmatpush.msrb.mxu1 %v1570_v49  ;;  %v2527_v10 = vld [vmem:[#allocation31_spill] sm:$0xff] }
 0x34c   :  { %v463_v56 = vmul.f32 %v1185_v53, %v458_v2 }
 0x34d   :  { %711 = vmatpush.msra.mxu3 %v1475_v16  ;;  %751 = vmatpush.msrb.mxu1 %v1580_v52  ;;  %v2530_v16 = vld [vmem:[#allocation34_spill] sm:$0xff] }
 0x34e   :  { %480 = vmatmul.f32.vlgmr.msra.gmra.mxu2 %v463_v56  ;;  %520 = vmatmul.f32.vlgmr.msra.gmra.mxu0 %v463_v56 }
 0x34f   :  { %688 = vmatpush.msra.mxu2 %v1443_v3  ;;  %712 = vmatpush.msra.mxu3 %v1485_v19  ;;  %v2521_v3 = vld [vmem:[#allocation18_spill] sm:$0xff]  ;;  %v2532_v19 = vld [vmem:[#allocation43_spill] sm:$0xff] }
 0x350   :  { %728 = vmatpush.msra.mxu0 %v1461_v11  ;;  %752 = vmatpush.msrb.mxu1 %v1590_v55  ;;  %v2528_v11 = vld [vmem:[#allocation42_spill] sm:$0xff] }
 0x351   :  { %689 = vmatpush.msra.mxu2 %v1445_v4  ;;  %713 = vmatpush.msra.mxu3 %v1496_v24  ;;  %v2522_v4 = vld [vmem:[#allocation30_spill] sm:$0xff]  ;;  %v2534_v24 = vld [vmem:[#allocation35_spill] sm:$0xff] }
 0x352   :  { %729 = vmatpush.msra.mxu0 %v2495_v25  ;;  %753 = vmatpush.msrb.mxu1 %v1601_v58  ;;  %v2003_v25 = vld [vmem:[%s2388_s2] ss:$0 sm:$0xff] }
 0x353   :  { %690 = vmatpush.msra.mxu2 %v1448_v5  ;;  %714 = vmatpush.msra.mxu3 %v1506_v27  ;;  %v2523_v5 = vld [vmem:[#allocation29_spill] sm:$0xff]  ;;  %v2536_v27 = vld [vmem:[#allocation36_spill] sm:$0xff] }
 0x354   :  { %730 = vmatpush.msra.mxu0 %v2496_v32  ;;  %754 = vmatpush.msrb.mxu1 %v1611_v61  ;;  %v2541_v32 = vld [vmem:[#allocation13_spill] sm:$0xff] }
 0x355   :  { %691 = vmatpush.msra.mxu2 %v1455_v9  ;;  %715 = vmatpush.msra.mxu3 %v1514_v29  ;;  %v2526_v9 = vld [vmem:[#allocation32_spill] sm:$0xff]  ;;  %v2538_v29 = vld [vmem:[#allocation37_spill] sm:$0xff] }
 0x356   :  { %731 = vmatpush.msra.mxu0 %v2497_v38  ;;  %755 = vmatpush.msrb.mxu1 %v1621_v0  ;;  %v130_v38 = vadd.f32 %v2003_v25, %v2541_v32  ;;  %v2061_v32 = vld [vmem:[#allocation4 + $0xd0] sm:$0xff] }
 0x357   :  { %692 = vmatpush.msra.mxu2 %v1463_v12  ;;  %716 = vmatpush.msra.mxu3 %v1558_v44  ;;  %v2529_v12 = vld [vmem:[#allocation22_spill] sm:$0xff] }
 0x358   :  { %732 = vmatpush.msra.mxu0 %v2498_v31  ;;  %756 = vmatpush.msrb.mxu1 %v1630_v6  ;;  %v2540_v44 = vld [vmem:[#allocation38_spill] sm:$0xff] }
 0x359   :  { %693 = vmatpush.msra.mxu2 %v1480_v18  ;;  %717 = vmatpush.msra.mxu3 %v1566_v47  ;;  %v2531_v18 = vld [vmem:[#allocation33_spill] sm:$0xff] }
 0x35a   :  { %733 = vmatpush.msra.mxu0 %v1560_v45  ;;  %757 = vmatpush.msrb.mxu1 %v1638_v21 }
 0x35b   :  { %694 = vmatpush.msra.mxu2 %v1490_v22  ;;  %718 = vmatpush.msra.mxu3 %v1573_v50  ;;  %v2533_v22 = vld [vmem:[#allocation23_spill] sm:$0xff] }
 0x35c   :  { %734 = vmatpush.msra.mxu0 %v1568_v48  ;;  %758 = vmatpush.msrb.mxu1 %v1648_v36 }
 0x35d   :  { %695 = vmatpush.msra.mxu2 %v1501_v26  ;;  %719 = vmatpush.msra.mxu3 %v2500_v17  ;;  %v2535_v26 = vld [vmem:[#allocation24_spill] sm:$0xff] }
 0x35e   :  { %735 = vmatpush.msra.mxu0 %v1575_v51  ;;  %759 = vmatpush.msrb.mxu1 %v2501_v59 }
 0x35f   :  { %696 = vmatpush.msra.mxu2 %v1509_v28  ;;  %720 = vmatpush.msra.mxu3 %v2504_v23  ;;  %v2537_v28 = vld [vmem:[#allocation25_spill] sm:$0xff] }
 0x360   :  { %736 = vmatpush.msra.mxu0 %v1585_v54  ;;  %760 = vmatpush.msrb.mxu1 %v2505_v34 }
 0x361   :  { %697 = vmatpush.msra.mxu2 %v2521_v3  ;;  %721 = vmatpush.msra.mxu3 %v2522_v4 }
 0x362   :  { %737 = vmatpush.msra.mxu0 %v2523_v5  ;;  %761 = vmatpush.msrb.mxu1 %v2524_v7 }
 0x363   :  { %698 = vmatpush.msra.mxu2 %v2525_v8  ;;  %722 = vmatpush.msra.mxu3 %v2526_v9 }
 0x364   :  { %738 = vmatpush.msra.mxu0 %v2527_v10  ;;  %762 = vmatpush.msrb.mxu1 %v2528_v11 }
 0x365   :  { %699 = vmatpush.msra.mxu2 %v2529_v12  ;;  %723 = vmatpush.msra.mxu3 %v2530_v16 }
 0x366   :  { %739 = vmatpush.msra.mxu0 %v2531_v18  ;;  %763 = vmatpush.msrb.mxu1 %v2532_v19 }
 0x367   :  { %700 = vmatpush.msra.mxu2 %v2533_v22 }
 0x368   :  { %740 = vmatpush.msra.mxu0 %v2534_v24 }
 0x369   :  { %701 = vmatpush.msra.mxu2 %v2535_v26 }
 0x36a   :  { %741 = vmatpush.msra.mxu0 %v2536_v27 }
 0x36b   :  { %702 = vmatpush.msra.mxu2 %v2537_v28 }
 0x36c   :  { %742 = vmatpush.msra.mxu0 %v2538_v29 }
 0x36d   :  { %703 = vmatpush.msra.mxu2 %v2539_v39  ;;  %v2025_v39 = vld [vmem:[#allocation4 + $0x1f0] sm:$0xff] }
 0x36e   :  { %743 = vmatpush.msra.mxu0 %v2540_v44 }
 0x3c3   :  { %v541_v45 = vpop.f32.mrf.mxu1 }
 0x3c9   :  { %v501_v51 = vpop.f32.mrf.mxu3 }
 0x3cb   :  { %v521_v47 = vpop.f32.mrf.mxu0 }
 0x3cc   :  { %v542_v48 = vadd.f32 %v541_v45, %v521_v47  ;;  %v2033_v47 = vld [vmem:[#allocation4 + $0x1d0] sm:$0xff] }
 0x3ce   :  { %v544_v50 = vadd.f32 %v542_v48, %v2517_v14 }
 0x3d0   :  { %1186 = vtanh.f32 %v544_v50  ;;  %v2037_v50 = vld [vmem:[#allocation4 + $0x1c0] sm:$0xff] }
 0x3d1   :  { %v481_v54 = vpop.f32.mrf.mxu2 }
 0x3d2   :  { %v502_v31 = vadd.f32 %v501_v51, %v481_v54  ;;  %v2047_v51 = vld [vmem:[#allocation4 + $0xf8] sm:$0xff]  ;;  %v2057_v54 = vld [vmem:[#allocation4 + $0xe8] sm:$0xff] }
 0x3d4   :  { %v561_v63 = vadd.f32 %v502_v31, %v130_v38  ;;  %v2064_v38 = vld [vmem:[#allocation4 + $0x190] sm:$0xff]  ;;  %v2071_v31 = vld [vmem:[#allocation4 + $0xc0] sm:$0xff] }
 0x3d6   :  { %v1187_v33 = vpop.eup %1186  ;;  %1188 = vtanh.f32 %v561_v63  ;;  %v2074_v63 = vld [vmem:[#allocation4 + $0x180] sm:$0xff] }
 0x3d7   :  { %v546_v41 = vmul.f32 %v1187_v33, %v2519_v35  ;;  %v2081_v33 = vld [vmem:[#allocation4 + $0xb0] sm:$0xff] }
 0x3d9   :  { %v547_v40 = vadd.f32 %v546_v41, %v2520_v30  ;;  %v2084_v41 = vld [vmem:[#allocation4 + $0x170] sm:$0xff] }
 0x3db   :  { %550 = vrot.lane.b32.xlu1 %v547_v40, %s1383_s21  ;;  %548 = vrot.lane.b32.xlu0 %v547_v40, %s1382_s20 }
 0x3dc   :  { %v1189_v57 = vpop.eup %1188 }
 0x3dd   :  { %v563_v62 = vmul.f32 %v1189_v57, %v2519_v35  ;;  %v2094_v57 = vld [vmem:[#allocation4 + $0x160] sm:$0xff] }
 0x3df   :  { %v564_v20 = vadd.f32 %v563_v62, %v2520_v30  ;;  %v2101_v62 = vld [vmem:[#allocation4 + $0x90] sm:$0xff] }
 0x3e1   :  { %565 = vrot.lane.b32.xlu2 %v564_v20, %s1382_s20 }
 0x3e3   :  { %552 = vrot.lane.b32.xlu1 %v547_v40, %s1381_s19  ;;  %567 = vrot.lane.b32.xlu0 %v564_v20, %s1383_s21 }
 0x3e9   :  { %569 = vrot.lane.b32.xlu2 %v564_v20, %s1381_s19 }
 0x43b   :  { %v566_v2 = vpop.permute.xlu2 %565 }
 0x43c   :  { %v571_v3 = vmul.f32 %v566_v2, %v1932_v60 }
 0x443   :  { %v570_v45 = vpop.permute.xlu2 %569 }
 0x44d   :  { %v551_v13 = vpop.permute.xlu1 %550  ;;  %v549_v1 = vpop.permute.xlu0 %548 }
 0x44e   :  { %v555_v42 = vmul.f32 %v551_v13, %v547_v40  ;;  %v554_v37 = vmul.f32 %v549_v1, %v1928_v15  ;;  %v2029_v15 = vld [vmem:[#allocation4 + $0x1e0] sm:$0xff]  ;;  %v2119_v1 = vld [vmem:[#allocation4 + $0x70] sm:$0xff] }
 0x44f   :  { %v2091_v40 = vld [vmem:[#allocation4 + $0xa0] sm:$0xff] }
 0x450   :  { %v2018_v53 = vadd.f32 %v555_v42, %v554_v37  ;;  %v2111_v13 = vld [vmem:[#allocation4 + $0x80] sm:$0xff]  ;;  %v2123_v42 = vld [vmem:[#allocation4 + $0x78] sm:$0xff] }
 0x452   :  { %1190 = vtanh.f32 %v2018_v53 }
 0x455   :  { %v568_v56 = vpop.permute.xlu0 %567  ;;  %v553_v22 = vpop.permute.xlu1 %552 }
 0x456   :  { %v572_v8 = vmul.f32 %v568_v56, %v564_v20  ;;  %v2104_v20 = vld [vmem:[#allocation4 + $0x150] sm:$0xff] }
 0x458   :  { %v1191_v12 = vpop.eup %1190  ;;  %v2022_v26 = vadd.f32 %v572_v8, %v571_v3 }
 0x459   :  { %v558_v28 = vmul.f32 %v1191_v12, %v553_v22 }
 0x45a   :  { %1192 = vtanh.f32 %v2022_v26 }
 0x45b   :  { %612 = vmatmul.f32.vlgmr.msrb.gmra.mxu3 %v558_v28  ;;  %652 = vmatmul.f32.vlgmr.msra.gmra.mxu1 %v558_v28 }
 0x45c   :  { %820 = vmatpush.msrb.mxu3 %v2025_v39  ;;  %860 = vmatpush.msra.mxu1 %v1552_v43  ;;  %v2041_v43 = vld [vmem:[#allocation4 + $0xf0] sm:$0xff] }
 0x45e   :  { %821 = vmatpush.msrb.mxu3 %v2029_v15  ;;  %861 = vmatpush.msra.mxu1 %v1562_v46  ;;  %v2044_v46 = vld [vmem:[#allocation4 + $0x1b0] sm:$0xff] }
 0x460   :  { %v1193_v60 = vpop.eup %1192  ;;  %822 = vmatpush.msrb.mxu3 %v2033_v47  ;;  %862 = vmatpush.msra.mxu1 %v1570_v49  ;;  %v2051_v49 = vld [vmem:[#allocation4 + $0xe0] sm:$0xff] }
 0x461   :  { %v575_v48 = vmul.f32 %v1193_v60, %v570_v45 }
 0x462   :  { %823 = vmatpush.msrb.mxu3 %v2037_v50  ;;  %863 = vmatpush.msra.mxu1 %v1580_v52  ;;  %v2054_v52 = vld [vmem:[#allocation4 + $0x1a0] sm:$0xff] }
 0x463   :  { %592 = vmatmul.f32.vlgmr.msrb.gmra.mxu2 %v575_v48  ;;  %632 = vmatmul.f32.vlgmr.msrb.gmra.mxu0 %v575_v48 }
 0x464   :  { %800 = vmatpush.msrb.mxu2 %v2041_v43  ;;  %824 = vmatpush.msrb.mxu3 %v2044_v46 }
 0x465   :  { %840 = vmatpush.msrb.mxu0 %v2047_v51  ;;  %864 = vmatpush.msra.mxu1 %v1590_v55  ;;  %v2067_v55 = vld [vmem:[#allocation4 + $0xd8] sm:$0xff] }
 0x466   :  { %801 = vmatpush.msrb.mxu2 %v2051_v49  ;;  %825 = vmatpush.msrb.mxu3 %v2054_v52 }
 0x467   :  { %841 = vmatpush.msrb.mxu0 %v2057_v54  ;;  %865 = vmatpush.msra.mxu1 %v1601_v58  ;;  %v2077_v58 = vld [vmem:[#allocation4 + $0xc8] sm:$0xff] }
 0x468   :  { %802 = vmatpush.msrb.mxu2 %v2061_v32  ;;  %826 = vmatpush.msrb.mxu3 %v2064_v38 }
 0x469   :  { %842 = vmatpush.msrb.mxu0 %v2067_v55  ;;  %866 = vmatpush.msra.mxu1 %v1611_v61  ;;  %v2087_v61 = vld [vmem:[#allocation4 + $0xb8] sm:$0xff] }
 0x46a   :  { %803 = vmatpush.msrb.mxu2 %v2071_v31  ;;  %827 = vmatpush.msrb.mxu3 %v2074_v63 }
 0x46b   :  { %843 = vmatpush.msrb.mxu0 %v2077_v58  ;;  %867 = vmatpush.msra.mxu1 %v1621_v0  ;;  %v2097_v0 = vld [vmem:[#allocation4 + $0xa8] sm:$0xff] }
 0x46c   :  { %804 = vmatpush.msrb.mxu2 %v2081_v33  ;;  %828 = vmatpush.msrb.mxu3 %v2084_v41 }
 0x46d   :  { %844 = vmatpush.msrb.mxu0 %v2087_v61  ;;  %868 = vmatpush.msra.mxu1 %v1630_v6  ;;  %v2107_v6 = vld [vmem:[#allocation4 + $0x98] sm:$0xff] }
 0x46e   :  { %805 = vmatpush.msrb.mxu2 %v2091_v40  ;;  %829 = vmatpush.msrb.mxu3 %v2094_v57 }
 0x46f   :  { %845 = vmatpush.msrb.mxu0 %v2097_v0  ;;  %869 = vmatpush.msra.mxu1 %v1638_v21  ;;  %v2115_v21 = vld [vmem:[#allocation4 + $0x88] sm:$0xff] }
 0x470   :  { %806 = vmatpush.msrb.mxu2 %v2101_v62  ;;  %830 = vmatpush.msrb.mxu3 %v2104_v20 }
 0x471   :  { %846 = vmatpush.msrb.mxu0 %v2107_v6  ;;  %870 = vmatpush.msra.mxu1 %v1648_v36  ;;  %v2127_v36 = vld [vmem:[#allocation4 + $0x60] sm:$0xff] }
 0x472   :  { %807 = vmatpush.msrb.mxu2 %v2111_v13  ;;  %831 = vmatpush.msrb.mxu3 %v2500_v17  ;;  %v2133_v17 = vld [vmem:[#allocation4 + $0x50] sm:$0xff] }
 0x473   :  { %847 = vmatpush.msrb.mxu0 %v2115_v21  ;;  %871 = vmatpush.msra.mxu1 %v2501_v59  ;;  %v2139_v59 = vld [vmem:[#allocation4 + $0x40] sm:$0xff] }
 0x474   :  { %808 = vmatpush.msrb.mxu2 %v2119_v1  ;;  %832 = vmatpush.msrb.mxu3 %v2504_v23  ;;  %v2145_v23 = vld [vmem:[#allocation4 + $0x30] sm:$0xff] }
 0x475   :  { %848 = vmatpush.msrb.mxu0 %v2123_v42  ;;  %872 = vmatpush.msra.mxu1 %v2505_v34  ;;  %v2149_v34 = vld [vmem:[#allocation4 + $0x20] sm:$0xff] }
 0x476   :  { %809 = vmatpush.msrb.mxu2 %v2127_v36  ;;  %833 = vmatpush.msrb.mxu3 %v2522_v4  ;;  %v2153_v4 = vld [vmem:[#allocation4 + $0x10] sm:$0xff] }
 0x477   :  { %849 = vmatpush.msrb.mxu0 %v2523_v5  ;;  %873 = vmatpush.msra.mxu1 %v2524_v7  ;;  %v2157_v5 = vld [vmem:[#allocation4] sm:$0xff] }
 0x478   :  { %810 = vmatpush.msrb.mxu2 %v2133_v17  ;;  %834 = vmatpush.msrb.mxu3 %v2526_v9 }
 0x479   :  { %850 = vmatpush.msrb.mxu0 %v2527_v10  ;;  %874 = vmatpush.msra.mxu1 %v2528_v11 }
 0x47a   :  { %811 = vmatpush.msrb.mxu2 %v2139_v59  ;;  %835 = vmatpush.msrb.mxu3 %v2530_v16 }
 0x47b   :  { %851 = vmatpush.msrb.mxu0 %v2531_v18  ;;  %875 = vmatpush.msra.mxu1 %v2532_v19  ;;  %v2542_v19 = vld [vmem:[#allocation15_spill] sm:$0xff] }
 0x47c   :  { %812 = vmatpush.msrb.mxu2 %v2145_v23 }
 0x47d   :  { %852 = vmatpush.msrb.mxu0 %v2534_v24  ;;  %v133_v24 = vadd.f32 %v2003_v25, %v2542_v19 }
 0x47e   :  { %813 = vmatpush.msrb.mxu2 %v2149_v34 }
 0x47f   :  { %853 = vmatpush.msrb.mxu0 %v2536_v27 }
 0x480   :  { %814 = vmatpush.msrb.mxu2 %v2153_v4 }
 0x481   :  { %854 = vmatpush.msrb.mxu0 %v2538_v29 }
 0x482   :  { %815 = vmatpush.msrb.mxu2 %v2157_v5 }
 0x483   :  { %855 = vmatpush.msrb.mxu0 %v2540_v44 }
 0x4d8   :  { %v653_v7 = vpop.f32.mrf.mxu1 }
 0x4de   :  { %v613_v16 = vpop.f32.mrf.mxu3 }
 0x4e0   :  { %v633_v9 = vpop.f32.mrf.mxu0 }
 0x4e1   :  { %v654_v10 = vadd.f32 %v653_v7, %v633_v9 }
 0x4e3   :  { %v656_v11 = vadd.f32 %v654_v10, %v2517_v14 }
 0x4e5   :  { %1194 = vtanh.f32 %v656_v11 }
 0x4e6   :  { %v593_v18 = vpop.f32.mrf.mxu2 }
 0x4e7   :  { %v614_v27 = vadd.f32 %v613_v16, %v593_v18 }
 0x4e9   :  { %v673_v37 = vadd.f32 %v614_v27, %v133_v24  ;;  %v2187_v24 = vld [vmem:[#allocation4 + $0x1e8] sm:$0xff] }
 0x4eb   :  { %v1195_v29 = vpop.eup %1194  ;;  %1196 = vtanh.f32 %v673_v37  ;;  %v2191_v37 = vld [vmem:[#allocation4 + $0x1d8] sm:$0xff] }
 0x4ec   :  { %v658_v2 = vmul.f32 %v1195_v29, %v2519_v35 }
 0x4ee   :  { %v659_v56 = vadd.f32 %v658_v2, %v2520_v30  ;;  %v2276_v2 = vld [vmem:[#allocation4 + $0x28] sm:$0xff] }
 0x4f0   :  { %662 = vrot.lane.b32.xlu1 %v659_v56, %s1383_s21  ;;  %660 = vrot.lane.b32.xlu0 %v659_v56, %s1382_s20 }
 0x4f1   :  { %v1197_v44 = vpop.eup %1196 }
 0x4f2   :  { %v675_v3 = vmul.f32 %v1197_v44, %v2519_v35 }
 0x4f4   :  { %v676_v8 = vadd.f32 %v675_v3, %v2520_v30 }
 0x4f6   :  { %677 = vrot.lane.b32.xlu2 %v676_v8, %s1382_s20 }
 0x4f8   :  { %664 = vrot.lane.b32.xlu1 %v659_v56, %s1381_s19  ;;  %679 = vrot.lane.b32.xlu0 %v676_v8, %s1383_s21 }
 0x4fe   :  { %681 = vrot.lane.b32.xlu2 %v676_v8, %s1381_s19 }
 0x550   :  { %v678_v48 = vpop.permute.xlu2 %677 }
 0x551   :  { %v683_v9 = vmul.f32 %v678_v48, %v2022_v26 }
 0x558   :  { %v682_v27 = vpop.permute.xlu2 %681 }
 0x562   :  { %v663_v12 = vpop.permute.xlu1 %662  ;;  %v661_v22 = vpop.permute.xlu0 %660 }
 0x563   :  { %v667_v28 = vmul.f32 %v663_v12, %v659_v56  ;;  %v666_v60 = vmul.f32 %v661_v22, %v2018_v53  ;;  %v2183_v53 = vld [vmem:[#allocation4 + $0x1f8] sm:$0xff]  ;;  %v2284_v56 = vld [vmem:[#allocation4 + $0x8] sm:$0xff]  ;;  %v2543_v22 = vld [vmem:[#allocation16_spill] sm:$0xff] }
 0x565   :  { %v2175_v45 = vadd.f32 %v667_v28, %v666_v60 }
 0x567   :  { %1198 = vtanh.f32 %v2175_v45 }
 0x56a   :  { %v680_v7 = vpop.permute.xlu0 %679  ;;  %v665_v16 = vpop.permute.xlu1 %664 }
 0x56b   :  { %v684_v10 = vmul.f32 %v680_v7, %v676_v8 }
 0x56d   :  { %v1199_v11 = vpop.eup %1198  ;;  %v2179_v18 = vadd.f32 %v684_v10, %v683_v9 }
 0x56e   :  { %v670_v19 = vmul.f32 %v1199_v11, %v665_v16 }
 0x56f   :  { %1200 = vtanh.f32 %v2179_v18 }
 0x570   :  { %724 = vmatmul.f32.vlgmr.msra.gmra.mxu3 %v670_v19  ;;  %764 = vmatmul.f32.vlgmr.msrb.gmra.mxu1 %v670_v19 }
 0x571   :  { %932 = vmatpush.msra.mxu3 %v2025_v39  ;;  %972 = vmatpush.msrb.mxu1 %v2183_v53  ;;  %v2195_v39 = vld [vmem:[#allocation4 + $0x1c8] sm:$0xff] }
 0x573   :  { %933 = vmatpush.msra.mxu3 %v2029_v15  ;;  %973 = vmatpush.msrb.mxu1 %v2187_v24  ;;  %v2201_v15 = vld [vmem:[#allocation4 + $0x1b8] sm:$0xff] }
 0x575   :  { %v1201_v26 = vpop.eup %1200  ;;  %934 = vmatpush.msra.mxu3 %v2033_v47  ;;  %974 = vmatpush.msrb.mxu1 %v2191_v37  ;;  %v2207_v47 = vld [vmem:[#allocation4 + $0x1a8] sm:$0xff] }
 0x576   :  { %v687_v29 = vmul.f32 %v1201_v26, %v682_v27 }
 0x577   :  { %935 = vmatpush.msra.mxu3 %v2037_v50  ;;  %975 = vmatpush.msrb.mxu1 %v2195_v39  ;;  %v2213_v50 = vld [vmem:[#allocation4 + $0x198] sm:$0xff] }
 0x578   :  { %704 = vmatmul.f32.vlgmr.msra.gmra.mxu2 %v687_v29  ;;  %744 = vmatmul.f32.vlgmr.msra.gmra.mxu0 %v687_v29 }
 0x579   :  { %912 = vmatpush.msra.mxu2 %v2041_v43  ;;  %936 = vmatpush.msra.mxu3 %v2044_v46  ;;  %v2219_v43 = vld [vmem:[#allocation4 + $0x188] sm:$0xff]  ;;  %v2225_v46 = vld [vmem:[#allocation4 + $0x178] sm:$0xff] }
 0x57a   :  { %952 = vmatpush.msra.mxu0 %v2047_v51  ;;  %976 = vmatpush.msrb.mxu1 %v2201_v15 }
 0x57b   :  { %913 = vmatpush.msra.mxu2 %v2051_v49  ;;  %937 = vmatpush.msra.mxu3 %v2054_v52  ;;  %v2231_v49 = vld [vmem:[#allocation4 + $0x168] sm:$0xff]  ;;  %v2237_v52 = vld [vmem:[#allocation4 + $0x158] sm:$0xff] }
 0x57c   :  { %953 = vmatpush.msra.mxu0 %v2057_v54  ;;  %977 = vmatpush.msrb.mxu1 %v2207_v47 }
 0x57d   :  { %914 = vmatpush.msra.mxu2 %v2061_v32  ;;  %938 = vmatpush.msra.mxu3 %v2064_v38  ;;  %v1278_v32 = vld [vmem:[#allocation4 + $0x140] sm:$0xff]  ;;  %v2242_v38 = vld [vmem:[#allocation4 + $0x148] sm:$0xff] }
 0x57e   :  { %954 = vmatpush.msra.mxu0 %v2067_v55  ;;  %978 = vmatpush.msrb.mxu1 %v2213_v50 }
 0x57f   :  { %915 = vmatpush.msra.mxu2 %v2071_v31  ;;  %939 = vmatpush.msra.mxu3 %v2074_v63  ;;  %v1280_v31 = vld [vmem:[#allocation4 + $0x130] sm:$0xff]  ;;  %v2247_v63 = vld [vmem:[#allocation4 + $0x138] sm:$0xff] }
 0x580   :  { %955 = vmatpush.msra.mxu0 %v2077_v58  ;;  %979 = vmatpush.msrb.mxu1 %v2219_v43 }
 0x581   :  { %916 = vmatpush.msra.mxu2 %v2081_v33  ;;  %940 = vmatpush.msra.mxu3 %v2084_v41  ;;  %v1282_v33 = vld [vmem:[#allocation4 + $0x120] sm:$0xff]  ;;  %v2251_v41 = vld [vmem:[#allocation4 + $0x68] sm:$0xff] }
 0x582   :  { %956 = vmatpush.msra.mxu0 %v2087_v61  ;;  %980 = vmatpush.msrb.mxu1 %v2225_v46 }
 0x583   :  { %917 = vmatpush.msra.mxu2 %v2091_v40  ;;  %941 = vmatpush.msra.mxu3 %v2094_v57  ;;  %v2254_v40 = vld [vmem:[#allocation4 + $0x128] sm:$0xff]  ;;  %v1285_v57 = vld [vmem:[#allocation4 + $0x110] sm:$0xff] }
 0x584   :  { %957 = vmatpush.msra.mxu0 %v2097_v0  ;;  %981 = vmatpush.msrb.mxu1 %v2231_v49 }
 0x585   :  { %918 = vmatpush.msra.mxu2 %v2101_v62  ;;  %942 = vmatpush.msra.mxu3 %v2104_v20  ;;  %v2258_v62 = vld [vmem:[#allocation4 + $0x58] sm:$0xff] }
 0x586   :  { %958 = vmatpush.msra.mxu0 %v2107_v6  ;;  %982 = vmatpush.msrb.mxu1 %v2237_v52  ;;  %v2261_v20 = vld [vmem:[#allocation4 + $0x118] sm:$0xff] }
 0x587   :  { %919 = vmatpush.msra.mxu2 %v2111_v13  ;;  %943 = vmatpush.msra.mxu3 %v1278_v32  ;;  %v1288_v13 = vld [vmem:[#allocation4 + $0x100] sm:$0xff] }
 0x588   :  { %959 = vmatpush.msra.mxu0 %v2115_v21  ;;  %983 = vmatpush.msrb.mxu1 %v2242_v38 }
 0x589   :  { %920 = vmatpush.msra.mxu2 %v2119_v1  ;;  %944 = vmatpush.msra.mxu3 %v1280_v31  ;;  %v2265_v1 = vld [vmem:[#allocation4 + $0x48] sm:$0xff] }
 0x58a   :  { %960 = vmatpush.msra.mxu0 %v2123_v42  ;;  %984 = vmatpush.msrb.mxu1 %v2247_v63 }
 0x58b   :  { %921 = vmatpush.msra.mxu2 %v2127_v36  ;;  %945 = vmatpush.msra.mxu3 %v1282_v33  ;;  %v2268_v36 = vld [vmem:[#allocation4 + $0x108] sm:$0xff] }
 0x58c   :  { %961 = vmatpush.msra.mxu0 %v2251_v41  ;;  %985 = vmatpush.msrb.mxu1 %v2254_v40 }
 0x58d   :  { %922 = vmatpush.msra.mxu2 %v2133_v17  ;;  %946 = vmatpush.msra.mxu3 %v1285_v57  ;;  %v2272_v17 = vld [vmem:[#allocation4 + $0x38] sm:$0xff] }
 0x58e   :  { %962 = vmatpush.msra.mxu0 %v2258_v62  ;;  %986 = vmatpush.msrb.mxu1 %v2261_v20 }
 0x58f   :  { %923 = vmatpush.msra.mxu2 %v2139_v59  ;;  %947 = vmatpush.msra.mxu3 %v1288_v13  ;;  %v2280_v59 = vld [vmem:[#allocation4 + $0x18] sm:$0xff] }
 0x590   :  { %963 = vmatpush.msra.mxu0 %v2265_v1  ;;  %987 = vmatpush.msrb.mxu1 %v2268_v36 }
 0x591   :  { %924 = vmatpush.msra.mxu2 %v2145_v23 }
 0x592   :  { %964 = vmatpush.msra.mxu0 %v2272_v17 }
 0x593   :  { %925 = vmatpush.msra.mxu2 %v2149_v34 }
 0x594   :  { %965 = vmatpush.msra.mxu0 %v2276_v2 }
 0x595   :  { %926 = vmatpush.msra.mxu2 %v2153_v4  ;;  %v136_v4 = vadd.f32 %v2003_v25, %v2543_v22 }
 0x596   :  { %966 = vmatpush.msra.mxu0 %v2280_v59 }
 0x597   :  { %927 = vmatpush.msra.mxu2 %v2157_v5 }
 0x598   :  { %967 = vmatpush.msra.mxu0 %v2284_v56 }
 0x5ed   :  { %v765_v23 = vpop.f32.mrf.mxu1 }
 0x5f3   :  { %v725_v8 = vpop.f32.mrf.mxu3 }
 0x5f5   :  { %v745_v44 = vpop.f32.mrf.mxu0 }
 0x5f6   :  { %v766_v3 = vadd.f32 %v765_v23, %v745_v44 }
 0x5f8   :  { %v768_v34 = vadd.f32 %v766_v3, %v2517_v14 }
 0x5fa   :  { %1202 = vtanh.f32 %v768_v34 }
 0x5fb   :  { %v705_v12 = vpop.f32.mrf.mxu2 }
 0x5fc   :  { %v726_v28 = vadd.f32 %v725_v8, %v705_v12 }
 0x5fe   :  { %v785_v60 = vadd.f32 %v726_v28, %v136_v4 }
 0x600   :  { %v1203_v48 = vpop.eup %1202  ;;  %1204 = vtanh.f32 %v785_v60 }
 0x601   :  { %v770_v5 = vmul.f32 %v1203_v48, %v2519_v35  ;;  %v2545_v48 = vld [vmem:[#allocation27_spill] sm:$0xff] }
 0x603   :  { %v771_v7 = vadd.f32 %v770_v5, %v2520_v30  ;;  %v142_v5 = vadd.f32 %v2003_v25, %v2545_v48 }
 0x605   :  { %774 = vrot.lane.b32.xlu1 %v771_v7, %s1383_s21  ;;  %772 = vrot.lane.b32.xlu0 %v771_v7, %s1382_s20 }
 0x606   :  { %v1205_v9 = vpop.eup %1204 }
 0x607   :  { %v787_v14 = vmul.f32 %v1205_v9, %v2519_v35 }
 0x609   :  { %v788_v10 = vadd.f32 %v787_v14, %v2520_v30 }
 0x60b   :  { %789 = vrot.lane.b32.xlu2 %v788_v10, %s1382_s20 }
 0x60d   :  { %776 = vrot.lane.b32.xlu1 %v771_v7, %s1381_s19  ;;  %791 = vrot.lane.b32.xlu0 %v788_v10, %s1383_s21 }
 0x613   :  { %793 = vrot.lane.b32.xlu2 %v788_v10, %s1381_s19 }
 0x665   :  { %v790_v29 = vpop.permute.xlu2 %789 }
 0x666   :  { %v795_v31 = vmul.f32 %v790_v29, %v2179_v18 }
 0x66d   :  { %v794_v3 = vpop.permute.xlu2 %793 }
 0x677   :  { %v775_v11 = vpop.permute.xlu1 %774  ;;  %v773_v16 = vpop.permute.xlu0 %772 }
 0x678   :  { %v779_v19 = vmul.f32 %v775_v11, %v771_v7  ;;  %v778_v26 = vmul.f32 %v773_v16, %v2175_v45 }
 0x67a   :  { %v2301_v27 = vadd.f32 %v779_v19, %v778_v26 }
 0x67c   :  { %1206 = vtanh.f32 %v2301_v27 }
 0x67f   :  { %v792_v32 = vpop.permute.xlu0 %791  ;;  %v777_v13 = vpop.permute.xlu1 %776 }
 0x680   :  { %v796_v33 = vmul.f32 %v792_v32, %v788_v10 }
 0x682   :  { %v1207_v57 = vpop.eup %1206  ;;  %v2305_v23 = vadd.f32 %v796_v33, %v795_v31 }
 0x683   :  { %v782_v44 = vmul.f32 %v1207_v57, %v777_v13 }
 0x684   :  { %1208 = vtanh.f32 %v2305_v23 }
 0x685   :  { %836 = vmatmul.f32.vlgmr.msrb.gmra.mxu3 %v782_v44  ;;  %876 = vmatmul.f32.vlgmr.msra.gmra.mxu1 %v782_v44 }
 0x686   :  { %1044 = vmatpush.msrb.mxu3 %v2183_v53 }
 0x688   :  { %1045 = vmatpush.msrb.mxu3 %v2187_v24 }
 0x68a   :  { %v1209_v45 = vpop.eup %1208  ;;  %1046 = vmatpush.msrb.mxu3 %v2191_v37 }
 0x68b   :  { %v799_v34 = vmul.f32 %v1209_v45, %v794_v3 }
 0x68c   :  { %1047 = vmatpush.msrb.mxu3 %v2195_v39 }
 0x68d   :  { %816 = vmatmul.f32.vlgmr.msrb.gmra.mxu2 %v799_v34  ;;  %856 = vmatmul.f32.vlgmr.msrb.gmra.mxu0 %v799_v34 }
 0x68e   :  { %1024 = vmatpush.msrb.mxu2 %v2047_v51  ;;  %1048 = vmatpush.msrb.mxu3 %v2201_v15 }
 0x690   :  { %1025 = vmatpush.msrb.mxu2 %v2057_v54  ;;  %1049 = vmatpush.msrb.mxu3 %v2207_v47 }
 0x692   :  { %1026 = vmatpush.msrb.mxu2 %v2067_v55  ;;  %1050 = vmatpush.msrb.mxu3 %v2213_v50 }
 0x694   :  { %1027 = vmatpush.msrb.mxu2 %v2077_v58  ;;  %1051 = vmatpush.msrb.mxu3 %v2219_v43  ;;  %v2343_v58 = vld [vmem:[%s2390_s4] sm:$0xff]  ;;  %s1386_s4 = smov [#allocation9]  }
 0x695   :  { %s1128_s3 = sshll.u32 %s1386_s4, 4  ;;  %s1129_s3 = int_to_ptr.vmem [resolvable:$true] %s1128_s3 }
 0x696   :  { %1028 = vmatpush.msrb.mxu2 %v2087_v61  ;;  %1052 = vmatpush.msrb.mxu3 %v2225_v46 }
 0x698   :  { %1029 = vmatpush.msrb.mxu2 %v2097_v0  ;;  %1053 = vmatpush.msrb.mxu3 %v2231_v49 }
 0x69a   :  { %1030 = vmatpush.msrb.mxu2 %v2107_v6  ;;  %1054 = vmatpush.msrb.mxu3 %v2237_v52 }
 0x69c   :  { %1031 = vmatpush.msrb.mxu2 %v2115_v21  ;;  %1055 = vmatpush.msrb.mxu3 %v2242_v38  ;;  %v2544_v21 = vld [vmem:[#allocation17_spill] sm:$0xff] }
 0x69e   :  { %1032 = vmatpush.msrb.mxu2 %v2123_v42  ;;  %1056 = vmatpush.msrb.mxu3 %v2247_v63  ;;  %v139_v42 = vadd.f32 %v2003_v25, %v2544_v21 }
 0x6a0   :  { %1033 = vmatpush.msrb.mxu2 %v2251_v41  ;;  %1057 = vmatpush.msrb.mxu3 %v2254_v40 }
 0x6a2   :  { %1034 = vmatpush.msrb.mxu2 %v2258_v62  ;;  %1058 = vmatpush.msrb.mxu3 %v2261_v20 }
 0x6a4   :  { %1035 = vmatpush.msrb.mxu2 %v2265_v1  ;;  %1059 = vmatpush.msrb.mxu3 %v2268_v36 }
 0x6a6   :  { %1036 = vmatpush.msrb.mxu2 %v2272_v17 }
 0x6a8   :  { %1037 = vmatpush.msrb.mxu2 %v2276_v2 }
 0x6aa   :  { %1038 = vmatpush.msrb.mxu2 %v2280_v59 }
 0x6ac   :  { %1039 = vmatpush.msrb.mxu2 %v2284_v56 }
 0x702   :  { %v877_v51 = vpop.f32.mrf.mxu1 }
 0x708   :  { %v837_v0 = vpop.f32.mrf.mxu3 }
 0x70a   :  { %v857_v54 = vpop.f32.mrf.mxu0 }
 0x70b   :  { %v878_v55 = vadd.f32 %v877_v51, %v857_v54 }
 0x70d   :  { %v880_v61 = vadd.f32 %v2343_v58, %v878_v55 }
 0x70f   :  { %1210 = vtanh.f32 %v880_v61 }
 0x710   :  { %v817_v6 = vpop.f32.mrf.mxu2 }
 0x711   :  { %v838_v18 = vadd.f32 %v837_v0, %v817_v6 }
 0x713   :  { %v897_v53 = vadd.f32 %v838_v18, %v139_v42 }
 0x715   :  { %v1211_v24 = vpop.eup %1210  ;;  %1212 = vtanh.f32 %v897_v53 }
 0x716   :  { %v882_v37 = vmul.f32 %v1211_v24, %v2519_v35  ;;  %v1094_v24 = vld [vmem:[#allocation7 + $0x78] sm:$0xff] }
 0x717   :  { %1102 = vmatpush.msrb.mxu0 %v1094_v24 }
 0x718   :  { %v883_v39 = vadd.f32 %v882_v37, %v2520_v30  ;;  %v1093_v37 = vld [vmem:[#allocation7 + $0x70] sm:$0xff] }
 0x719   :  { %1103 = vmatpush.msrb.mxu0 %v1093_v37 }
 0x71a   :  { %886 = vrot.lane.b32.xlu1 %v883_v39, %s1383_s21  ;;  %884 = vrot.lane.b32.xlu0 %v883_v39, %s1382_s20 }
 0x71b   :  { %v1213_v15 = vpop.eup %1212 }
 0x71c   :  { %v899_v47 = vmul.f32 %v1213_v15, %v2519_v35  ;;  %v1091_v15 = vld [vmem:[#allocation7 + $0x60] sm:$0xff] }
 0x71e   :  { %v900_v50 = vadd.f32 %v899_v47, %v2520_v30  ;;  %v1089_v47 = vld [vmem:[#allocation7 + $0x50] sm:$0xff] }
 0x720   :  { %901 = vrot.lane.b32.xlu2 %v900_v50, %s1382_s20 }
 0x722   :  { %888 = vrot.lane.b32.xlu1 %v883_v39, %s1381_s19  ;;  %903 = vrot.lane.b32.xlu0 %v900_v50, %s1383_s21 }
 0x728   :  { %905 = vrot.lane.b32.xlu2 %v900_v50, %s1381_s19 }
 0x77a   :  { %v902_v63 = vpop.permute.xlu2 %901 }
 0x77b   :  { %v907_v40 = vmul.f32 %v902_v63, %v2305_v23  ;;  %v1080_v63 = vld [vmem:[#allocation7 + $0x8] sm:$0xff] }
 0x782   :  { %v906_v59 = vpop.permute.xlu2 %905 }
 0x78c   :  { %v887_v43 = vpop.permute.xlu1 %886  ;;  %v885_v46 = vpop.permute.xlu0 %884 }
 0x78d   :  { %v891_v49 = vmul.f32 %v887_v43, %v883_v39  ;;  %v890_v52 = vmul.f32 %v885_v46, %v2301_v27  ;;  %v1092_v39 = vld [vmem:[#allocation7 + $0x68] sm:$0xff]  ;;  %v1085_v43 = vld [vmem:[#allocation7 + $0x30] sm:$0xff] }
 0x78e   :  { %1104 = vmatpush.msrb.mxu0 %v1092_v39  ;;  %v1084_v46 = vld [vmem:[#allocation7 + $0x28] sm:$0xff] }
 0x78f   :  { %v892_v38 = vadd.f32 %v891_v49, %v890_v52  ;;  %v1083_v49 = vld [vmem:[#allocation7 + $0x20] sm:$0xff]  ;;  %v1082_v52 = vld [vmem:[#allocation7 + $0x18] sm:$0xff] }
 0x790   :  { %1105 = vmatpush.msrb.mxu0 %v1091_v15 }
 0x791   :  { %1214 = vtanh.f32 %v892_v38 }
 0x794   :  { %v904_v41 = vpop.permute.xlu0 %903  ;;  %v889_v1 = vpop.permute.xlu1 %888 }
 0x795   :  { %v908_v62 = vmul.f32 %v904_v41, %v900_v50  ;;  %v1086_v50 = vld [vmem:[#allocation7 + $0x38] sm:$0xff]  ;;  %v1079_v41 = vld [vmem:[#allocation7] sm:$0xff] }
 0x797   :  { %v1215_v20 = vpop.eup %1214  ;;  %v909_v36 = vadd.f32 %v908_v62, %v907_v40  ;;  %v1165_v40 = vld [vmem:[#allocation3] ss:$0 sm:$0xff]  ;;  %v1385_v62 = vmov 0  }
 0x798   :  { %v894_v17 = vmul.f32 %v1215_v20, %v889_v1  ;;  %1163 = vset.pattern.permute.xlu0 %v1385_v62 }
 0x799   :  { %1216 = vtanh.f32 %v909_v36 }
 0x79a   :  { %948 = vmatmul.f32.vlgmr.msra.gmra.mxu3 %v894_v17  ;;  %988 = vmatmul.f32.vlgmr.msrb.gmra.mxu1 %v894_v17 }
 0x79f   :  { %v1217_v2 = vpop.eup %1216 }
 0x7a0   :  { %v911_v56 = vmul.f32 %v1217_v2, %v906_v59 }
 0x7a2   :  { %928 = vmatmul.f32.vlgmr.msra.gmra.mxu2 %v911_v56  ;;  %968 = vmatmul.f32.vlgmr.msra.gmra.mxu0 %v911_v56 }
 0x817   :  { %v989_v8 = vpop.f32.mrf.mxu1 }
 0x81d   :  { %v949_v28 = vpop.f32.mrf.mxu3 }
 0x81f   :  { %v969_v12 = vpop.f32.mrf.mxu0 }
 0x820   :  { %v990_v22 = vadd.f32 %v989_v8, %v969_v12 }
 0x822   :  { %v992_v4 = vadd.f32 %v2343_v58, %v990_v22 }
 0x824   :  { %1218 = vtanh.f32 %v992_v4 }
 0x825   :  { %v929_v60 = vpop.f32.mrf.mxu2 }
 0x826   :  { %v950_v7 = vadd.f32 %v949_v28, %v929_v60 }
 0x828   :  { %v1009_v9 = vadd.f32 %v950_v7, %v142_v5 }
 0x82a   :  { %v1219_v14 = vpop.eup %1218  ;;  %1220 = vtanh.f32 %v1009_v9 }
 0x82b   :  { %v994_v10 = vmul.f32 %v1219_v14, %v2519_v35 }
 0x82d   :  { %v995_v11 = vadd.f32 %v994_v10, %v2520_v30 }
 0x82f   :  { %998 = vrot.lane.b32.xlu1 %v995_v11, %s1383_s21  ;;  %996 = vrot.lane.b32.xlu0 %v995_v11, %s1382_s20 }
 0x830   :  { %v1221_v16 = vpop.eup %1220 }
 0x831   :  { %v1011_v19 = vmul.f32 %v1221_v16, %v2519_v35 }
 0x833   :  { %v1012_v26 = vadd.f32 %v1011_v19, %v2520_v30 }
 0x835   :  { %1013 = vrot.lane.b32.xlu2 %v1012_v26, %s1382_s20 }
 0x837   :  { %1000 = vrot.lane.b32.xlu1 %v995_v11, %s1381_s19  ;;  %1015 = vrot.lane.b32.xlu0 %v1012_v26, %s1383_s21 }
 0x83d   :  { %1017 = vrot.lane.b32.xlu2 %v1012_v26, %s1381_s19 }
 0x88f   :  { %v1014_v33 = vpop.permute.xlu2 %1013 }
 0x890   :  { %v1019_v13 = vmul.f32 %v1014_v33, %v909_v36 }
 0x897   :  { %v1018_v54 = vpop.permute.xlu2 %1017 }
 0x8a1   :  { %v999_v25 = vpop.permute.xlu1 %998  ;;  %v997_v27 = vpop.permute.xlu0 %996 }
 0x8a2   :  { %v1003_v29 = vmul.f32 %v999_v25, %v995_v11  ;;  %v1002_v32 = vmul.f32 %v997_v27, %v892_v38  ;;  %v1081_v38 = vld [vmem:[#allocation7 + $0x10] sm:$0xff] }
 0x8a4   :  { %v2373_v31 = vadd.f32 %v1003_v29, %v1002_v32 }
 0x8a6   :  { %1222 = vtanh.f32 %v2373_v31 }
 0x8a9   :  { %v1016_v57 = vpop.permute.xlu0 %1015  ;;  %v1001_v45 = vpop.permute.xlu1 %1000 }
 0x8aa   :  { %v1020_v23 = vmul.f32 %v1016_v57, %v1012_v26 }
 0x8ac   :  { %v1223_v44 = vpop.eup %1222  ;;  %v1021_v3 = vadd.f32 %v1020_v23, %v1019_v13 }
 0x8ad   :  { %v1006_v34 = vmul.f32 %v1223_v44, %v1001_v45 }
 0x8ae   :  { %1224 = vtanh.f32 %v1021_v3 }
 0x8af   :  { %1060 = vmatmul.f32.vlgmr.msrb.gmra.mxu3 %v1006_v34 }
 0x8b4   :  { %v1225_v51 = vpop.eup %1224 }
 0x8b5   :  { %v1023_v55 = vmul.f32 %v1225_v51, %v1018_v54 }
 0x8b7   :  { %1040 = vmatmul.f32.vlgmr.msrb.gmra.mxu2 %v1023_v55 }
 0x932   :  { %v1061_v61 = vpop.f32.mrf.mxu3 }
 0x93a   :  { %v1041_v0 = vpop.f32.mrf.mxu2 }
 0x93b   :  { %v1062_v6 = vadd.f32 %v1061_v61, %v1041_v0 }
 0x93d   :  { %v1064_v21 = vadd.f32 %v2343_v58, %v1062_v6  ;;  %v1090_v58 = vld [vmem:[#allocation7 + $0x58] sm:$0xff] }
 0x93e   :  { %1106 = vmatpush.msrb.mxu0 %v1090_v58 }
 0x93f   :  { %1226 = vtanh.f32 %v1064_v21 }
 0x940   :  { %1107 = vmatpush.msrb.mxu0 %v1089_v47 }
 0x945   :  { %v1227_v42 = vpop.eup %1226 }
 0x946   :  { %v1066_v18 = vmul.f32 %v1227_v42, %v2519_v35  ;;  %v1088_v35 = vld [vmem:[#allocation7 + $0x48] sm:$0xff] }
 0x947   :  { %1108 = vmatpush.msrb.mxu0 %v1088_v35 }
 0x948   :  { %v1067_v53 = vadd.f32 %v1066_v18, %v2520_v30  ;;  %v1087_v30 = vld [vmem:[#allocation7 + $0x40] sm:$0xff] }
 0x949   :  { %1109 = vmatpush.msrb.mxu0 %v1087_v30 }
 0x94a   :  { %1072 = vrot.lane.b32.xlu2 %v1067_v53, %s1381_s19  ;;  %1070 = vrot.lane.b32.xlu1 %v1067_v53, %s1383_s21 }
 0x94b   :  { %1068 = vrot.lane.b32.xlu0 %v1067_v53, %s1382_s20  ;;  %1110 = vmatpush.msrb.mxu0 %v1086_v50 }
 0x94d   :  { %1111 = vmatpush.msrb.mxu0 %v1085_v43 }
 0x94f   :  { %1112 = vmatpush.msrb.mxu0 %v1084_v46 }
 0x951   :  { %1113 = vmatpush.msrb.mxu0 %v1083_v49 }
 0x953   :  { %1114 = vmatpush.msrb.mxu0 %v1082_v52  ;;  %1099 = vperm.xlu0 %1163, %v1165_v40  }
 0x955   :  { %1115 = vmatpush.msrb.mxu0 %v1081_v38 }
 0x957   :  { %1116 = vmatpush.msrb.mxu0 %v1080_v63 }
 0x959   :  { %1117 = vmatpush.msrb.mxu0 %v1079_v41 }
 0x9a4   :  { %v1073_v56 = vpop.permute.xlu2 %1072 }
 0x9bc   :  { %v1071_v20 = vpop.permute.xlu1 %1070 }
 0x9bd   :  { %v1075_v1 = vmul.f32 %v1071_v20, %v1067_v53  ;;  %v1069_v36 = vpop.permute.xlu0 %1068 }
 0x9be   :  { %v1074_v17 = vmul.f32 %v1069_v36, %v2373_v31 }
 0x9c0   :  { %v1076_v2 = vadd.f32 %v1075_v1, %v1074_v17 }
 0x9c2   :  { %1228 = vtanh.f32 %v1076_v2 }
 0x9c5   :  { %v1100_v12 = vpop.permute.xlu0 %1099 }
 0x9c8   :  { %v1229_v59 = vpop.eup %1228 }
 0x9c9   :  { %v1078_v8 = vmul.f32 %v1229_v59, %v1073_v56 }
 0x9cb   :  { %1118 = vmatmul.f32.vlgmr.msrb.gmra.mxu0 %v1078_v8 }
 0xa48   :  { %v1119_v22 = vpop.f32.mrf.mxu0 }
 0xa49   :  { %v1120_v4 = vadd.f32 %v1119_v22, %v1100_v12 }
 0xa4b   :  { %1122 = vst [vmem:[#allocation9] sm:$0xff] %v1120_v4 }
 0xa4c   :  { %1133 = dma.vmem_to_hbm [thread:$0]  %s1129_s3, 128, %s1131_s17, [#allocation6]  }
 0xa4d   :  { %1372 = dma.done.wait [#allocation6], 128  }
 0xa4e   :  { %1373 = vsyncadd [#allocation6], 4294967168 }
 0xa4f   :  { %1138 = vsyncpa [#allocation5], 1 }
 0xa50   :  { %1139 = vsyncpa [#allocation8], 1 }
 0xa51   :  { %1140 = vsyncpa [#allocation6], 1 }

</bundles_post_ra>
